<compile_context>
chip_gen: v7x
topology: tpu7x:2x2x1
jax: 0.10.0
libtpu: 0.0.40
codegen_flags: <defaults>
</compile_context>

<pallas_src>
import math

import jax
import jax.numpy as jnp
from jax.experimental import pallas as pl
from jax.experimental.pallas import tpu as pltpu

# ---- static config (small, consistent with the module) ----
B = 2            # batch
SEQ_LEN = 16     # configs.seq_len (time steps)
N_VARS = 8       # number of variates / channels (tokens of the inverted transformer)
D_MODEL = 32     # configs.d_model
N_HEADS = 4      # configs.n_heads
E_HEAD = D_MODEL // N_HEADS
D_FF = 64        # configs.d_ff
E_LAYERS = 2     # configs.e_layers
LN_EPS = 1e-5    # torch.nn.LayerNorm default eps
SCALE = 1.0 / math.sqrt(E_HEAD)   # FullAttention: scale = 1/sqrt(E)


def _layer_norm(x, w, b):
    mu = jnp.mean(x, axis=-1, keepdims=True)
    xc = x - mu
    var = jnp.mean(xc * xc, axis=-1, keepdims=True)
    return xc * jax.lax.rsqrt(var + LN_EPS) * w + b


def _itransformer_kernel(x_ref, w_emb_ref, gvec_ref, wm_ref, wff2_ref, vec_ref, out_ref):
    """One grid step = one batch element (all N_VARS variate tokens)."""
    f32 = jnp.float32

    x = x_ref[0]                    # [SEQ_LEN, N_VARS]  (transpose fused into the dot below)
    gvec = gvec_ref[...]            # [8, 128]: row0 = b_emb, row1/2 = final LayerNorm w/b

    # ---- DataEmbedding_inverted: Linear(seq_len -> d_model) per variate (dropout = id) ----
    # h[n, d] = sum_l x[l, n] * w_emb[l, d] + b_emb[d]
    h = jax.lax.dot_general(x, w_emb_ref[...], (((0,), (0,)), ((), ())),
                            preferred_element_type=f32) + gvec[0:1, :D_MODEL]

    for layer in range(E_LAYERS):                       # statically unrolled
        wm = wm_ref[layer]                              # [D_MODEL, 4*D + D_FF] = [32, 192]
        w_ff2 = wff2_ref[layer]                         # [D_FF, D_MODEL]
        vec = vec_ref[layer]                            # [8, 128] biases + LN params

        # ---- fused Q|K|V projection: one MXU matmul ----
        qkv = (jnp.dot(h, wm[:, 0:3 * D_MODEL], preferred_element_type=f32)
               + vec[0:1, 0:3 * D_MODEL])

        # ---- all-head attention scores, stacked along sublanes -> ONE softmax pass ----
        s_parts = []
        for hh in range(N_HEADS):
            q = qkv[:, hh * E_HEAD:(hh + 1) * E_HEAD]
            k = qkv[:, D_MODEL + hh * E_HEAD:D_MODEL + (hh + 1) * E_HEAD]
            # q @ k^T (contract last dims; no explicit transpose)
            s_parts.append(jax.lax.dot_general(q, k, (((1,), (1,)), ((), ())),
                                               preferred_element_type=f32))
        s = jnp.concatenate(s_parts, axis=0) * SCALE     # [N_HEADS*N_VARS, N_VARS]
        m = jnp.max(s, axis=-1, keepdims=True)
        e = jnp.exp(s - m)
        a = e * pl.reciprocal(jnp.sum(e, axis=-1, keepdims=True), approx=True)

        # ---- per-head context accumulated directly through the out-projection
        #      (no lane-axis concat; extra [8,8]x[8,32] matmuls ride the idle MXU) ----
        attn_o = jnp.zeros((N_VARS, D_MODEL), f32)
        for hh in range(N_HEADS):
            a_h = a[hh * N_VARS:(hh + 1) * N_VARS, :]                        # [N, N]
            v_h = qkv[:, 2 * D_MODEL + hh * E_HEAD:2 * D_MODEL + (hh + 1) * E_HEAD]
            ctx = jnp.dot(a_h, v_h, preferred_element_type=f32)              # [N, E]
            attn_o = attn_o + jnp.dot(
                ctx, wm[hh * E_HEAD:(hh + 1) * E_HEAD, 3 * D_MODEL:4 * D_MODEL],
                preferred_element_type=f32)
        attn_o = attn_o + vec[1:2, 0:D_MODEL]

        # ---- residual + LayerNorm1 ----
        h = _layer_norm(h + attn_o, vec[4:5, 0:D_MODEL], vec[5:6, 0:D_MODEL])

        # ---- position-wise FFN (1x1 convs == Linear) + residual + LayerNorm2 ----
        y = (jnp.dot(h, wm[:, 4 * D_MODEL:4 * D_MODEL + D_FF], preferred_element_type=f32)
             + vec[2:3, 0:D_FF])
        y = jnp.maximum(y, 0.0)                              # activation = relu
        y = jnp.dot(y, w_ff2, preferred_element_type=f32) + vec[3:4, 0:D_MODEL]
        h = _layer_norm(h + y, vec[6:7, 0:D_MODEL], vec[7:8, 0:D_MODEL])

    # ---- Encoder's final LayerNorm ----
    h = _layer_norm(h, gvec[1:2, 0:D_MODEL], gvec[2:3, 0:D_MODEL])
    out_ref[0] = h


# ----------------------------------------------------------------------------- params


def init_params(key):
    """Deterministic parameter init (shapes dictated by the module's __init__)."""
    f32 = jnp.float32
    ks = iter(jax.random.split(key, 2 + 12 * E_LAYERS + 2))
    s = 0.1

    def nrm(shape, scale=s):
        return scale * jax.random.normal(next(ks), shape, f32)

    layers = []
    params = dict(
        w_emb=nrm((SEQ_LEN, D_MODEL)),
        b_emb=nrm((D_MODEL,), 0.05),
        layers=layers,
    )
    for _ in range(E_LAYERS):
        layers.append(dict(
            w_qkv=nrm((D_MODEL, 3 * D_MODEL)), b_qkv=nrm((3 * D_MODEL,), 0.05),
            w_o=nrm((D_MODEL, D_MODEL)),       b_o=nrm((D_MODEL,), 0.05),
            ln1_w=1.0 + nrm((D_MODEL,), 0.05), ln1_b=nrm((D_MODEL,), 0.05),
            w_ff1=nrm((D_MODEL, D_FF)),        b_ff1=nrm((D_FF,), 0.05),
            w_ff2=nrm((D_FF, D_MODEL)),        b_ff2=nrm((D_MODEL,), 0.05),
            ln2_w=1.0 + nrm((D_MODEL,), 0.05), ln2_b=nrm((D_MODEL,), 0.05),
        ))
    params["ln_f_w"] = 1.0 + nrm((D_MODEL,), 0.05)
    params["ln_f_b"] = nrm((D_MODEL,), 0.05)
    return params


def pack_params(params):
    """Pack everything into a few lane-dense slabs (done ONCE, outside the forward path)."""
    f32 = jnp.float32
    gvec = jnp.zeros((8, 128), f32)
    gvec = gvec.at[0, :D_MODEL].set(params["b_emb"])
    gvec = gvec.at[1, :D_MODEL].set(params["ln_f_w"])
    gvec = gvec.at[2, :D_MODEL].set(params["ln_f_b"])

    wm_list, wff2_list, vec_list = [], [], []
    for lp in params["layers"]:
        wm_list.append(jnp.concatenate([lp["w_qkv"], lp["w_o"], lp["w_ff1"]], axis=1))  # [32,192]
        wff2_list.append(lp["w_ff2"])                                                   # [64,32]
        vec = jnp.zeros((8, 128), f32)
        vec = vec.at[0, :3 * D_MODEL].set(lp["b_qkv"])
        vec = vec.at[1, :D_MODEL].set(lp["b_o"])
        vec = vec.at[2, :D_FF].set(lp["b_ff1"])
        vec = vec.at[3, :D_MODEL].set(lp["b_ff2"])
        vec = vec.at[4, :D_MODEL].set(lp["ln1_w"])
        vec = vec.at[5, :D_MODEL].set(lp["ln1_b"])
        vec = vec.at[6, :D_MODEL].set(lp["ln2_w"])
        vec = vec.at[7, :D_MODEL].set(lp["ln2_b"])
        vec_list.append(vec)

    wm_all = jnp.stack(wm_list)        # [E_LAYERS, 32, 192]
    wff2_all = jnp.stack(wff2_list)    # [E_LAYERS, 64, 32]
    vec_all = jnp.stack(vec_list)      # [E_LAYERS, 8, 128]
    return params["w_emb"], gvec, wm_all, wff2_all, vec_all


# ----------------------------------------------------------------------------- wrapper


def make_forward(params):
    """Pack params once and return a jitted forward: x_enc [B,L,N] -> [B, N*D_MODEL]."""
    w_emb, gvec, wm_all, wff2_all, vec_all = pack_params(params)

    const2 = lambda b: (0, 0)
    const3 = lambda b: (0, 0, 0)
    in_specs = [
        pl.BlockSpec((1, SEQ_LEN, N_VARS), lambda b: (b, 0, 0)),
        pl.BlockSpec((SEQ_LEN, D_MODEL), const2),
        pl.BlockSpec((8, 128), const2),
        pl.BlockSpec((E_LAYERS, D_MODEL, 4 * D_MODEL + D_FF), const3),
        pl.BlockSpec((E_LAYERS, D_FF, D_MODEL), const3),
        pl.BlockSpec((E_LAYERS, 8, 128), const3),
    ]

    call = pl.pallas_call(
        _itransformer_kernel,
        grid=(B,),
        in_specs=in_specs,
        out_specs=pl.BlockSpec((1, N_VARS, D_MODEL), lambda b: (b, 0, 0)),
        out_shape=jax.ShapeDtypeStruct((B, N_VARS, D_MODEL), jnp.float32),
        compiler_params=pltpu.CompilerParams(dimension_semantics=("parallel",)),
    )

    @jax.jit
    def forward(x_enc):
        out = call(x_enc, w_emb, gvec, wm_all, wff2_all, vec_all)
        return out.reshape(B, N_VARS * D_MODEL)        # contiguous reshape (free)

    return forward


# ----------------------------------------------------------------------------- reference


def _reference_forward(x_enc, params):
    """Pure-JAX mirror of the PyTorch forward (eval mode) for correctness checks."""
    x = jnp.transpose(x_enc, (0, 2, 1))                          # [B, N, L]
    h = x @ params["w_emb"] + params["b_emb"]                    # [B, N, D]
    Bn = x.shape[0]
    for lp in params["layers"]:
        qkv = h @ lp["w_qkv"] + lp["b_qkv"]
        q, k, v = jnp.split(qkv, 3, axis=-1)
        q = q.reshape(Bn, N_VARS, N_HEADS, E_HEAD)
        k = k.reshape(Bn, N_VARS, N_HEADS, E_HEAD)
        v = v.reshape(Bn, N_VARS, N_HEADS, E_HEAD)
        scores = jnp.einsum("blhe,bshe->bhls", q, k) * SCALE
        a = jax.nn.softmax(scores, axis=-1)
        o = jnp.einsum("bhls,bshe->blhe", a, v).reshape(Bn, N_VARS, D_MODEL)
        o = o @ lp["w_o"] + lp["b_o"]
        h = _layer_norm(h + o, lp["ln1_w"], lp["ln1_b"])
        y = jnp.maximum(h @ lp["w_ff1"] + lp["b_ff1"], 0.0)
        y = y @ lp["w_ff2"] + lp["b_ff2"]
        h = _layer_norm(h + y, lp["ln2_w"], lp["ln2_b"])
    h = _layer_norm(h, params["ln_f_w"], params["ln_f_b"])
    return h.reshape(Bn, -1)


if __name__ == "__main__":
    key = jax.random.PRNGKey(0)
    k_x, k_p = jax.random.split(key)
    x_enc = jax.random.normal(k_x, (B, SEQ_LEN, N_VARS), jnp.float32)
    params = init_params(k_p)

    forward = make_forward(params)          # packs parameters exactly once
    out = forward(x_enc)
    jax.block_until_ready(out)

    with jax.default_matmul_precision("highest"):
        ref = _reference_forward(x_enc, params)

    assert out.shape == (B, N_VARS * D_MODEL)
    max_err = float(jnp.max(jnp.abs(out - ref)))
    assert jnp.allclose(out, ref, atol=2e-2, rtol=2e-2), f"max abs err = {max_err}"
    print("KERNEL_OK")
</pallas_src>

<mosaic_0001>
module attributes {stable_mosaic.version = 11 : i64} {
  func.func @_itransformer_kernel(%arg0: i32, %arg1: memref<1x16x8xf32, #tpu.memory_space<vmem>>, %arg2: memref<16x32xf32, #tpu.memory_space<vmem>>, %arg3: memref<8x128xf32, #tpu.memory_space<vmem>>, %arg4: memref<2x32x192xf32, #tpu.memory_space<vmem>>, %arg5: memref<2x64x32xf32, #tpu.memory_space<vmem>>, %arg6: memref<2x8x128xf32, #tpu.memory_space<vmem>>, %arg7: memref<1x8x32xf32, #tpu.memory_space<vmem>>) attributes {dimension_semantics = [#tpu.dimension_semantics<parallel>], iteration_bounds = array<i64: 2>, scalar_prefetch = 0 : i64, scratch_operands = 0 : i64, tpu.core_type = #tpu.core_type<tc>, window_params = [{transform_indices = @transform_0, window_bounds = array<i64: 1, 16, 8>}, {pipeline_mode = #tpu.pipeline_mode<synchronous>, transform_indices = @transform_1, window_bounds = array<i64: 16, 32>}, {pipeline_mode = #tpu.pipeline_mode<synchronous>, transform_indices = @transform_2, window_bounds = array<i64: 8, 128>}, {pipeline_mode = #tpu.pipeline_mode<synchronous>, transform_indices = @transform_3, window_bounds = array<i64: 2, 32, 192>}, {pipeline_mode = #tpu.pipeline_mode<synchronous>, transform_indices = @transform_4, window_bounds = array<i64: 2, 64, 32>}, {pipeline_mode = #tpu.pipeline_mode<synchronous>, transform_indices = @transform_5, window_bounds = array<i64: 2, 8, 128>}, {transform_indices = @transform_6, window_bounds = array<i64: 1, 8, 32>}]} {
    %c0 = arith.constant 0 : index
    %c0_0 = arith.constant 0 : index
    %c0_1 = arith.constant 0 : index
    %0 = vector.load %arg1[%c0, %c0_0, %c0_1] : memref<1x16x8xf32, #tpu.memory_space<vmem>>, vector<1x16x8xf32>
    %1 = vector.shape_cast %0 : vector<1x16x8xf32> to vector<16x8xf32>
    %c0_2 = arith.constant 0 : index
    %c0_3 = arith.constant 0 : index
    %2 = vector.load %arg3[%c0_2, %c0_3] : memref<8x128xf32, #tpu.memory_space<vmem>>, vector<8x128xf32>
    %c0_4 = arith.constant 0 : index
    %c0_5 = arith.constant 0 : index
    %3 = vector.load %arg2[%c0_4, %c0_5] : memref<16x32xf32, #tpu.memory_space<vmem>>, vector<16x32xf32>
    %cst = arith.constant dense<0.000000e+00> : vector<8x32xf32>
    %4 = tpu.matmul %1, %3, %cst {dimension_numbers = #tpu.dot_dimension_numbers<[0], [0], [1], [1], [0, 1, 1, 1], [], []>} : vector<16x8xf32>, vector<16x32xf32>, vector<8x32xf32> -> vector<8x32xf32>
    %5 = vector.extract_strided_slice %2 {offsets = [0, 0], sizes = [1, 32], strides = [1, 1]} : vector<8x128xf32> to vector<1x32xf32>
    %6 = vector.broadcast %5 : vector<1x32xf32> to vector<8x32xf32>
    %7 = arith.addf %4, %6 : vector<8x32xf32>
    %c0_6 = arith.constant 0 : index
    %c0_7 = arith.constant 0 : index
    %c0_8 = arith.constant 0 : index
    %8 = vector.load %arg4[%c0_6, %c0_7, %c0_8] : memref<2x32x192xf32, #tpu.memory_space<vmem>>, vector<1x32x192xf32>
    %9 = vector.shape_cast %8 : vector<1x32x192xf32> to vector<32x192xf32>
    %c0_9 = arith.constant 0 : index
    %c0_10 = arith.constant 0 : index
    %c0_11 = arith.constant 0 : index
    %10 = vector.load %arg5[%c0_9, %c0_10, %c0_11] : memref<2x64x32xf32, #tpu.memory_space<vmem>>, vector<1x64x32xf32>
    %11 = vector.shape_cast %10 : vector<1x64x32xf32> to vector<64x32xf32>
    %c0_12 = arith.constant 0 : index
    %c0_13 = arith.constant 0 : index
    %c0_14 = arith.constant 0 : index
    %12 = vector.load %arg6[%c0_12, %c0_13, %c0_14] : memref<2x8x128xf32, #tpu.memory_space<vmem>>, vector<1x8x128xf32>
    %13 = vector.shape_cast %12 : vector<1x8x128xf32> to vector<8x128xf32>
    %14 = vector.extract_strided_slice %9 {offsets = [0, 0], sizes = [32, 96], strides = [1, 1]} : vector<32x192xf32> to vector<32x96xf32>
    %cst_15 = arith.constant dense<0.000000e+00> : vector<8x96xf32>
    %15 = tpu.matmul %7, %14, %cst_15 {dimension_numbers = #tpu.dot_dimension_numbers<[1], [0], [0], [1], [0, 0, 1, 1], [], []>} : vector<8x32xf32>, vector<32x96xf32>, vector<8x96xf32> -> vector<8x96xf32>
    %16 = vector.extract_strided_slice %13 {offsets = [0, 0], sizes = [1, 96], strides = [1, 1]} : vector<8x128xf32> to vector<1x96xf32>
    %17 = vector.broadcast %16 : vector<1x96xf32> to vector<8x96xf32>
    %18 = arith.addf %15, %17 : vector<8x96xf32>
    %19 = vector.extract_strided_slice %18 {offsets = [0, 0], sizes = [8, 8], strides = [1, 1]} : vector<8x96xf32> to vector<8x8xf32>
    %20 = vector.extract_strided_slice %18 {offsets = [0, 32], sizes = [8, 8], strides = [1, 1]} : vector<8x96xf32> to vector<8x8xf32>
    %cst_16 = arith.constant dense<0.000000e+00> : vector<8x8xf32>
    %21 = tpu.matmul %19, %20, %cst_16 {dimension_numbers = #tpu.dot_dimension_numbers<[1], [1], [0], [0], [0, 0, 1, 0], [], []>} : vector<8x8xf32>, vector<8x8xf32>, vector<8x8xf32> -> vector<8x8xf32>
    %22 = vector.extract_strided_slice %18 {offsets = [0, 8], sizes = [8, 8], strides = [1, 1]} : vector<8x96xf32> to vector<8x8xf32>
    %23 = vector.extract_strided_slice %18 {offsets = [0, 40], sizes = [8, 8], strides = [1, 1]} : vector<8x96xf32> to vector<8x8xf32>
    %cst_17 = arith.constant dense<0.000000e+00> : vector<8x8xf32>
    %24 = tpu.matmul %22, %23, %cst_17 {dimension_numbers = #tpu.dot_dimension_numbers<[1], [1], [0], [0], [0, 0, 1, 0], [], []>} : vector<8x8xf32>, vector<8x8xf32>, vector<8x8xf32> -> vector<8x8xf32>
    %25 = vector.extract_strided_slice %18 {offsets = [0, 16], sizes = [8, 8], strides = [1, 1]} : vector<8x96xf32> to vector<8x8xf32>
    %26 = vector.extract_strided_slice %18 {offsets = [0, 48], sizes = [8, 8], strides = [1, 1]} : vector<8x96xf32> to vector<8x8xf32>
    %cst_18 = arith.constant dense<0.000000e+00> : vector<8x8xf32>
    %27 = tpu.matmul %25, %26, %cst_18 {dimension_numbers = #tpu.dot_dimension_numbers<[1], [1], [0], [0], [0, 0, 1, 0], [], []>} : vector<8x8xf32>, vector<8x8xf32>, vector<8x8xf32> -> vector<8x8xf32>
    %28 = vector.extract_strided_slice %18 {offsets = [0, 24], sizes = [8, 8], strides = [1, 1]} : vector<8x96xf32> to vector<8x8xf32>
    %29 = vector.extract_strided_slice %18 {offsets = [0, 56], sizes = [8, 8], strides = [1, 1]} : vector<8x96xf32> to vector<8x8xf32>
    %cst_19 = arith.constant dense<0.000000e+00> : vector<8x8xf32>
    %30 = tpu.matmul %28, %29, %cst_19 {dimension_numbers = #tpu.dot_dimension_numbers<[1], [1], [0], [0], [0, 0, 1, 0], [], []>} : vector<8x8xf32>, vector<8x8xf32>, vector<8x8xf32> -> vector<8x8xf32>
    %31 = tpu.concatenate %21, %24, %27, %30 in 0 : vector<8x8xf32>, vector<8x8xf32>, vector<8x8xf32>, vector<8x8xf32> -> vector<32x8xf32>
    %cst_20 = arith.constant 0.353553385 : f32
    %32 = vector.broadcast %cst_20 : f32 to vector<32x8xf32>
    %33 = arith.mulf %31, %32 : vector<32x8xf32>
    %cst_21 = arith.constant dense<0xFF800000> : vector<32xf32>
    %34 = vector.multi_reduction <maximumf>, %33, %cst_21 [1] : vector<32x8xf32> to vector<32xf32>
    %35 = vector.shape_cast %34 : vector<32xf32> to vector<32x1xf32>
    %36 = vector.broadcast %35 : vector<32x1xf32> to vector<32x8xf32>
    %37 = arith.subf %33, %36 : vector<32x8xf32>
    %38 = math.exp %37 : vector<32x8xf32>
    %cst_22 = arith.constant dense<0.000000e+00> : vector<32xf32>
    %39 = vector.multi_reduction <add>, %38, %cst_22 [1] : vector<32x8xf32> to vector<32xf32>
    %40 = vector.shape_cast %39 : vector<32xf32> to vector<32x1xf32>
    %41 = tpu.reciprocal %40 {approx = true} : vector<32x1xf32> -> vector<32x1xf32>
    %42 = vector.broadcast %41 : vector<32x1xf32> to vector<32x8xf32>
    %43 = arith.mulf %38, %42 : vector<32x8xf32>
    %cst_23 = arith.constant 0.000000e+00 : f32
    %44 = vector.broadcast %cst_23 : f32 to vector<8x32xf32>
    %45 = vector.extract_strided_slice %43 {offsets = [0, 0], sizes = [8, 8], strides = [1, 1]} : vector<32x8xf32> to vector<8x8xf32>
    %46 = vector.extract_strided_slice %18 {offsets = [0, 64], sizes = [8, 8], strides = [1, 1]} : vector<8x96xf32> to vector<8x8xf32>
    %cst_24 = arith.constant dense<0.000000e+00> : vector<8x8xf32>
    %47 = tpu.matmul %45, %46, %cst_24 {dimension_numbers = #tpu.dot_dimension_numbers<[1], [0], [0], [1], [0, 0, 1, 1], [], []>} : vector<8x8xf32>, vector<8x8xf32>, vector<8x8xf32> -> vector<8x8xf32>
    %48 = vector.extract_strided_slice %9 {offsets = [0, 96], sizes = [8, 32], strides = [1, 1]} : vector<32x192xf32> to vector<8x32xf32>
    %cst_25 = arith.constant dense<0.000000e+00> : vector<8x32xf32>
    %49 = tpu.matmul %47, %48, %cst_25 {dimension_numbers = #tpu.dot_dimension_numbers<[1], [0], [0], [1], [0, 0, 1, 1], [], []>} : vector<8x8xf32>, vector<8x32xf32>, vector<8x32xf32> -> vector<8x32xf32>
    %50 = arith.addf %44, %49 : vector<8x32xf32>
    %51 = vector.extract_strided_slice %43 {offsets = [8, 0], sizes = [8, 8], strides = [1, 1]} : vector<32x8xf32> to vector<8x8xf32>
    %52 = vector.extract_strided_slice %18 {offsets = [0, 72], sizes = [8, 8], strides = [1, 1]} : vector<8x96xf32> to vector<8x8xf32>
    %cst_26 = arith.constant dense<0.000000e+00> : vector<8x8xf32>
    %53 = tpu.matmul %51, %52, %cst_26 {dimension_numbers = #tpu.dot_dimension_numbers<[1], [0], [0], [1], [0, 0, 1, 1], [], []>} : vector<8x8xf32>, vector<8x8xf32>, vector<8x8xf32> -> vector<8x8xf32>
    %54 = vector.extract_strided_slice %9 {offsets = [8, 96], sizes = [8, 32], strides = [1, 1]} : vector<32x192xf32> to vector<8x32xf32>
    %cst_27 = arith.constant dense<0.000000e+00> : vector<8x32xf32>
    %55 = tpu.matmul %53, %54, %cst_27 {dimension_numbers = #tpu.dot_dimension_numbers<[1], [0], [0], [1], [0, 0, 1, 1], [], []>} : vector<8x8xf32>, vector<8x32xf32>, vector<8x32xf32> -> vector<8x32xf32>
    %56 = arith.addf %50, %55 : vector<8x32xf32>
    %57 = vector.extract_strided_slice %43 {offsets = [16, 0], sizes = [8, 8], strides = [1, 1]} : vector<32x8xf32> to vector<8x8xf32>
    %58 = vector.extract_strided_slice %18 {offsets = [0, 80], sizes = [8, 8], strides = [1, 1]} : vector<8x96xf32> to vector<8x8xf32>
    %cst_28 = arith.constant dense<0.000000e+00> : vector<8x8xf32>
    %59 = tpu.matmul %57, %58, %cst_28 {dimension_numbers = #tpu.dot_dimension_numbers<[1], [0], [0], [1], [0, 0, 1, 1], [], []>} : vector<8x8xf32>, vector<8x8xf32>, vector<8x8xf32> -> vector<8x8xf32>
    %60 = vector.extract_strided_slice %9 {offsets = [16, 96], sizes = [8, 32], strides = [1, 1]} : vector<32x192xf32> to vector<8x32xf32>
    %cst_29 = arith.constant dense<0.000000e+00> : vector<8x32xf32>
    %61 = tpu.matmul %59, %60, %cst_29 {dimension_numbers = #tpu.dot_dimension_numbers<[1], [0], [0], [1], [0, 0, 1, 1], [], []>} : vector<8x8xf32>, vector<8x32xf32>, vector<8x32xf32> -> vector<8x32xf32>
    %62 = arith.addf %56, %61 : vector<8x32xf32>
    %63 = vector.extract_strided_slice %43 {offsets = [24, 0], sizes = [8, 8], strides = [1, 1]} : vector<32x8xf32> to vector<8x8xf32>
    %64 = vector.extract_strided_slice %18 {offsets = [0, 88], sizes = [8, 8], strides = [1, 1]} : vector<8x96xf32> to vector<8x8xf32>
    %cst_30 = arith.constant dense<0.000000e+00> : vector<8x8xf32>
    %65 = tpu.matmul %63, %64, %cst_30 {dimension_numbers = #tpu.dot_dimension_numbers<[1], [0], [0], [1], [0, 0, 1, 1], [], []>} : vector<8x8xf32>, vector<8x8xf32>, vector<8x8xf32> -> vector<8x8xf32>
    %66 = vector.extract_strided_slice %9 {offsets = [24, 96], sizes = [8, 32], strides = [1, 1]} : vector<32x192xf32> to vector<8x32xf32>
    %cst_31 = arith.constant dense<0.000000e+00> : vector<8x32xf32>
    %67 = tpu.matmul %65, %66, %cst_31 {dimension_numbers = #tpu.dot_dimension_numbers<[1], [0], [0], [1], [0, 0, 1, 1], [], []>} : vector<8x8xf32>, vector<8x32xf32>, vector<8x32xf32> -> vector<8x32xf32>
    %68 = arith.addf %62, %67 : vector<8x32xf32>
    %69 = vector.extract_strided_slice %13 {offsets = [1, 0], sizes = [1, 32], strides = [1, 1]} : vector<8x128xf32> to vector<1x32xf32>
    %70 = vector.broadcast %69 : vector<1x32xf32> to vector<8x32xf32>
    %71 = arith.addf %68, %70 : vector<8x32xf32>
    %72 = arith.addf %7, %71 : vector<8x32xf32>
    %73 = vector.extract_strided_slice %13 {offsets = [4, 0], sizes = [1, 32], strides = [1, 1]} : vector<8x128xf32> to vector<1x32xf32>
    %74 = vector.extract_strided_slice %13 {offsets = [5, 0], sizes = [1, 32], strides = [1, 1]} : vector<8x128xf32> to vector<1x32xf32>
    %cst_32 = arith.constant dense<0.000000e+00> : vector<8xf32>
    %75 = vector.multi_reduction <add>, %72, %cst_32 [1] : vector<8x32xf32> to vector<8xf32>
    %76 = vector.shape_cast %75 : vector<8xf32> to vector<8x1xf32>
    %cst_33 = arith.constant 3.200000e+01 : f32
    %77 = vector.broadcast %cst_33 : f32 to vector<8x1xf32>
    %78 = arith.divf %76, %77 : vector<8x1xf32>
    %79 = vector.broadcast %78 : vector<8x1xf32> to vector<8x32xf32>
    %80 = arith.subf %72, %79 : vector<8x32xf32>
    %81 = arith.mulf %80, %80 : vector<8x32xf32>
    %cst_34 = arith.constant dense<0.000000e+00> : vector<8xf32>
    %82 = vector.multi_reduction <add>, %81, %cst_34 [1] : vector<8x32xf32> to vector<8xf32>
    %83 = vector.shape_cast %82 : vector<8xf32> to vector<8x1xf32>
    %cst_35 = arith.constant 3.200000e+01 : f32
    %84 = vector.broadcast %cst_35 : f32 to vector<8x1xf32>
    %85 = arith.divf %83, %84 : vector<8x1xf32>
    %cst_36 = arith.constant 9.99999974E-6 : f32
    %86 = vector.broadcast %cst_36 : f32 to vector<8x1xf32>
    %87 = arith.addf %85, %86 : vector<8x1xf32>
    %88 = math.rsqrt %87 : vector<8x1xf32>
    %89 = vector.broadcast %88 : vector<8x1xf32> to vector<8x32xf32>
    %90 = arith.mulf %80, %89 : vector<8x32xf32>
    %91 = vector.broadcast %73 : vector<1x32xf32> to vector<8x32xf32>
    %92 = arith.mulf %90, %91 : vector<8x32xf32>
    %93 = vector.broadcast %74 : vector<1x32xf32> to vector<8x32xf32>
    %94 = arith.addf %92, %93 : vector<8x32xf32>
    %95 = vector.extract_strided_slice %9 {offsets = [0, 128], sizes = [32, 64], strides = [1, 1]} : vector<32x192xf32> to vector<32x64xf32>
    %cst_37 = arith.constant dense<0.000000e+00> : vector<8x64xf32>
    %96 = tpu.matmul %94, %95, %cst_37 {dimension_numbers = #tpu.dot_dimension_numbers<[1], [0], [0], [1], [0, 0, 1, 1], [], []>} : vector<8x32xf32>, vector<32x64xf32>, vector<8x64xf32> -> vector<8x64xf32>
    %97 = vector.extract_strided_slice %13 {offsets = [2, 0], sizes = [1, 64], strides = [1, 1]} : vector<8x128xf32> to vector<1x64xf32>
    %98 = vector.broadcast %97 : vector<1x64xf32> to vector<8x64xf32>
    %99 = arith.addf %96, %98 : vector<8x64xf32>
    %cst_38 = arith.constant 0.000000e+00 : f32
    %100 = vector.broadcast %cst_38 : f32 to vector<8x64xf32>
    %101 = arith.maximumf %99, %100 : vector<8x64xf32>
    %cst_39 = arith.constant dense<0.000000e+00> : vector<8x32xf32>
    %102 = tpu.matmul %101, %11, %cst_39 {dimension_numbers = #tpu.dot_dimension_numbers<[1], [0], [0], [1], [0, 0, 1, 1], [], []>} : vector<8x64xf32>, vector<64x32xf32>, vector<8x32xf32> -> vector<8x32xf32>
    %103 = vector.extract_strided_slice %13 {offsets = [3, 0], sizes = [1, 32], strides = [1, 1]} : vector<8x128xf32> to vector<1x32xf32>
    %104 = vector.broadcast %103 : vector<1x32xf32> to vector<8x32xf32>
    %105 = arith.addf %102, %104 : vector<8x32xf32>
    %106 = arith.addf %94, %105 : vector<8x32xf32>
    %107 = vector.extract_strided_slice %13 {offsets = [6, 0], sizes = [1, 32], strides = [1, 1]} : vector<8x128xf32> to vector<1x32xf32>
    %108 = vector.extract_strided_slice %13 {offsets = [7, 0], sizes = [1, 32], strides = [1, 1]} : vector<8x128xf32> to vector<1x32xf32>
    %cst_40 = arith.constant dense<0.000000e+00> : vector<8xf32>
    %109 = vector.multi_reduction <add>, %106, %cst_40 [1] : vector<8x32xf32> to vector<8xf32>
    %110 = vector.shape_cast %109 : vector<8xf32> to vector<8x1xf32>
    %cst_41 = arith.constant 3.200000e+01 : f32
    %111 = vector.broadcast %cst_41 : f32 to vector<8x1xf32>
    %112 = arith.divf %110, %111 : vector<8x1xf32>
    %113 = vector.broadcast %112 : vector<8x1xf32> to vector<8x32xf32>
    %114 = arith.subf %106, %113 : vector<8x32xf32>
    %115 = arith.mulf %114, %114 : vector<8x32xf32>
    %cst_42 = arith.constant dense<0.000000e+00> : vector<8xf32>
    %116 = vector.multi_reduction <add>, %115, %cst_42 [1] : vector<8x32xf32> to vector<8xf32>
    %117 = vector.shape_cast %116 : vector<8xf32> to vector<8x1xf32>
    %cst_43 = arith.constant 3.200000e+01 : f32
    %118 = vector.broadcast %cst_43 : f32 to vector<8x1xf32>
    %119 = arith.divf %117, %118 : vector<8x1xf32>
    %cst_44 = arith.constant 9.99999974E-6 : f32
    %120 = vector.broadcast %cst_44 : f32 to vector<8x1xf32>
    %121 = arith.addf %119, %120 : vector<8x1xf32>
    %122 = math.rsqrt %121 : vector<8x1xf32>
    %123 = vector.broadcast %122 : vector<8x1xf32> to vector<8x32xf32>
    %124 = arith.mulf %114, %123 : vector<8x32xf32>
    %125 = vector.broadcast %107 : vector<1x32xf32> to vector<8x32xf32>
    %126 = arith.mulf %124, %125 : vector<8x32xf32>
    %127 = vector.broadcast %108 : vector<1x32xf32> to vector<8x32xf32>
    %128 = arith.addf %126, %127 : vector<8x32xf32>
    %c1 = arith.constant 1 : index
    %c0_45 = arith.constant 0 : index
    %c0_46 = arith.constant 0 : index
    %129 = vector.load %arg4[%c1, %c0_45, %c0_46] : memref<2x32x192xf32, #tpu.memory_space<vmem>>, vector<1x32x192xf32>
    %130 = vector.shape_cast %129 : vector<1x32x192xf32> to vector<32x192xf32>
    %c1_47 = arith.constant 1 : index
    %c0_48 = arith.constant 0 : index
    %c0_49 = arith.constant 0 : index
    %131 = vector.load %arg5[%c1_47, %c0_48, %c0_49] : memref<2x64x32xf32, #tpu.memory_space<vmem>>, vector<1x64x32xf32>
    %132 = vector.shape_cast %131 : vector<1x64x32xf32> to vector<64x32xf32>
    %c1_50 = arith.constant 1 : index
    %c0_51 = arith.constant 0 : index
    %c0_52 = arith.constant 0 : index
    %133 = vector.load %arg6[%c1_50, %c0_51, %c0_52] : memref<2x8x128xf32, #tpu.memory_space<vmem>>, vector<1x8x128xf32>
    %134 = vector.shape_cast %133 : vector<1x8x128xf32> to vector<8x128xf32>
    %135 = vector.extract_strided_slice %130 {offsets = [0, 0], sizes = [32, 96], strides = [1, 1]} : vector<32x192xf32> to vector<32x96xf32>
    %cst_53 = arith.constant dense<0.000000e+00> : vector<8x96xf32>
    %136 = tpu.matmul %128, %135, %cst_53 {dimension_numbers = #tpu.dot_dimension_numbers<[1], [0], [0], [1], [0, 0, 1, 1], [], []>} : vector<8x32xf32>, vector<32x96xf32>, vector<8x96xf32> -> vector<8x96xf32>
    %137 = vector.extract_strided_slice %134 {offsets = [0, 0], sizes = [1, 96], strides = [1, 1]} : vector<8x128xf32> to vector<1x96xf32>
    %138 = vector.broadcast %137 : vector<1x96xf32> to vector<8x96xf32>
    %139 = arith.addf %136, %138 : vector<8x96xf32>
    %140 = vector.extract_strided_slice %139 {offsets = [0, 0], sizes = [8, 8], strides = [1, 1]} : vector<8x96xf32> to vector<8x8xf32>
    %141 = vector.extract_strided_slice %139 {offsets = [0, 32], sizes = [8, 8], strides = [1, 1]} : vector<8x96xf32> to vector<8x8xf32>
    %cst_54 = arith.constant dense<0.000000e+00> : vector<8x8xf32>
    %142 = tpu.matmul %140, %141, %cst_54 {dimension_numbers = #tpu.dot_dimension_numbers<[1], [1], [0], [0], [0, 0, 1, 0], [], []>} : vector<8x8xf32>, vector<8x8xf32>, vector<8x8xf32> -> vector<8x8xf32>
    %143 = vector.extract_strided_slice %139 {offsets = [0, 8], sizes = [8, 8], strides = [1, 1]} : vector<8x96xf32> to vector<8x8xf32>
    %144 = vector.extract_strided_slice %139 {offsets = [0, 40], sizes = [8, 8], strides = [1, 1]} : vector<8x96xf32> to vector<8x8xf32>
    %cst_55 = arith.constant dense<0.000000e+00> : vector<8x8xf32>
    %145 = tpu.matmul %143, %144, %cst_55 {dimension_numbers = #tpu.dot_dimension_numbers<[1], [1], [0], [0], [0, 0, 1, 0], [], []>} : vector<8x8xf32>, vector<8x8xf32>, vector<8x8xf32> -> vector<8x8xf32>
    %146 = vector.extract_strided_slice %139 {offsets = [0, 16], sizes = [8, 8], strides = [1, 1]} : vector<8x96xf32> to vector<8x8xf32>
    %147 = vector.extract_strided_slice %139 {offsets = [0, 48], sizes = [8, 8], strides = [1, 1]} : vector<8x96xf32> to vector<8x8xf32>
    %cst_56 = arith.constant dense<0.000000e+00> : vector<8x8xf32>
    %148 = tpu.matmul %146, %147, %cst_56 {dimension_numbers = #tpu.dot_dimension_numbers<[1], [1], [0], [0], [0, 0, 1, 0], [], []>} : vector<8x8xf32>, vector<8x8xf32>, vector<8x8xf32> -> vector<8x8xf32>
    %149 = vector.extract_strided_slice %139 {offsets = [0, 24], sizes = [8, 8], strides = [1, 1]} : vector<8x96xf32> to vector<8x8xf32>
    %150 = vector.extract_strided_slice %139 {offsets = [0, 56], sizes = [8, 8], strides = [1, 1]} : vector<8x96xf32> to vector<8x8xf32>
    %cst_57 = arith.constant dense<0.000000e+00> : vector<8x8xf32>
    %151 = tpu.matmul %149, %150, %cst_57 {dimension_numbers = #tpu.dot_dimension_numbers<[1], [1], [0], [0], [0, 0, 1, 0], [], []>} : vector<8x8xf32>, vector<8x8xf32>, vector<8x8xf32> -> vector<8x8xf32>
    %152 = tpu.concatenate %142, %145, %148, %151 in 0 : vector<8x8xf32>, vector<8x8xf32>, vector<8x8xf32>, vector<8x8xf32> -> vector<32x8xf32>
    %cst_58 = arith.constant 0.353553385 : f32
    %153 = vector.broadcast %cst_58 : f32 to vector<32x8xf32>
    %154 = arith.mulf %152, %153 : vector<32x8xf32>
    %cst_59 = arith.constant dense<0xFF800000> : vector<32xf32>
    %155 = vector.multi_reduction <maximumf>, %154, %cst_59 [1] : vector<32x8xf32> to vector<32xf32>
    %156 = vector.shape_cast %155 : vector<32xf32> to vector<32x1xf32>
    %157 = vector.broadcast %156 : vector<32x1xf32> to vector<32x8xf32>
    %158 = arith.subf %154, %157 : vector<32x8xf32>
    %159 = math.exp %158 : vector<32x8xf32>
    %cst_60 = arith.constant dense<0.000000e+00> : vector<32xf32>
    %160 = vector.multi_reduction <add>, %159, %cst_60 [1] : vector<32x8xf32> to vector<32xf32>
    %161 = vector.shape_cast %160 : vector<32xf32> to vector<32x1xf32>
    %162 = tpu.reciprocal %161 {approx = true} : vector<32x1xf32> -> vector<32x1xf32>
    %163 = vector.broadcast %162 : vector<32x1xf32> to vector<32x8xf32>
    %164 = arith.mulf %159, %163 : vector<32x8xf32>
    %cst_61 = arith.constant 0.000000e+00 : f32
    %165 = vector.broadcast %cst_61 : f32 to vector<8x32xf32>
    %166 = vector.extract_strided_slice %164 {offsets = [0, 0], sizes = [8, 8], strides = [1, 1]} : vector<32x8xf32> to vector<8x8xf32>
    %167 = vector.extract_strided_slice %139 {offsets = [0, 64], sizes = [8, 8], strides = [1, 1]} : vector<8x96xf32> to vector<8x8xf32>
    %cst_62 = arith.constant dense<0.000000e+00> : vector<8x8xf32>
    %168 = tpu.matmul %166, %167, %cst_62 {dimension_numbers = #tpu.dot_dimension_numbers<[1], [0], [0], [1], [0, 0, 1, 1], [], []>} : vector<8x8xf32>, vector<8x8xf32>, vector<8x8xf32> -> vector<8x8xf32>
    %169 = vector.extract_strided_slice %130 {offsets = [0, 96], sizes = [8, 32], strides = [1, 1]} : vector<32x192xf32> to vector<8x32xf32>
    %cst_63 = arith.constant dense<0.000000e+00> : vector<8x32xf32>
    %170 = tpu.matmul %168, %169, %cst_63 {dimension_numbers = #tpu.dot_dimension_numbers<[1], [0], [0], [1], [0, 0, 1, 1], [], []>} : vector<8x8xf32>, vector<8x32xf32>, vector<8x32xf32> -> vector<8x32xf32>
    %171 = arith.addf %165, %170 : vector<8x32xf32>
    %172 = vector.extract_strided_slice %164 {offsets = [8, 0], sizes = [8, 8], strides = [1, 1]} : vector<32x8xf32> to vector<8x8xf32>
    %173 = vector.extract_strided_slice %139 {offsets = [0, 72], sizes = [8, 8], strides = [1, 1]} : vector<8x96xf32> to vector<8x8xf32>
    %cst_64 = arith.constant dense<0.000000e+00> : vector<8x8xf32>
    %174 = tpu.matmul %172, %173, %cst_64 {dimension_numbers = #tpu.dot_dimension_numbers<[1], [0], [0], [1], [0, 0, 1, 1], [], []>} : vector<8x8xf32>, vector<8x8xf32>, vector<8x8xf32> -> vector<8x8xf32>
    %175 = vector.extract_strided_slice %130 {offsets = [8, 96], sizes = [8, 32], strides = [1, 1]} : vector<32x192xf32> to vector<8x32xf32>
    %cst_65 = arith.constant dense<0.000000e+00> : vector<8x32xf32>
    %176 = tpu.matmul %174, %175, %cst_65 {dimension_numbers = #tpu.dot_dimension_numbers<[1], [0], [0], [1], [0, 0, 1, 1], [], []>} : vector<8x8xf32>, vector<8x32xf32>, vector<8x32xf32> -> vector<8x32xf32>
    %177 = arith.addf %171, %176 : vector<8x32xf32>
    %178 = vector.extract_strided_slice %164 {offsets = [16, 0], sizes = [8, 8], strides = [1, 1]} : vector<32x8xf32> to vector<8x8xf32>
    %179 = vector.extract_strided_slice %139 {offsets = [0, 80], sizes = [8, 8], strides = [1, 1]} : vector<8x96xf32> to vector<8x8xf32>
    %cst_66 = arith.constant dense<0.000000e+00> : vector<8x8xf32>
    %180 = tpu.matmul %178, %179, %cst_66 {dimension_numbers = #tpu.dot_dimension_numbers<[1], [0], [0], [1], [0, 0, 1, 1], [], []>} : vector<8x8xf32>, vector<8x8xf32>, vector<8x8xf32> -> vector<8x8xf32>
    %181 = vector.extract_strided_slice %130 {offsets = [16, 96], sizes = [8, 32], strides = [1, 1]} : vector<32x192xf32> to vector<8x32xf32>
    %cst_67 = arith.constant dense<0.000000e+00> : vector<8x32xf32>
    %182 = tpu.matmul %180, %181, %cst_67 {dimension_numbers = #tpu.dot_dimension_numbers<[1], [0], [0], [1], [0, 0, 1, 1], [], []>} : vector<8x8xf32>, vector<8x32xf32>, vector<8x32xf32> -> vector<8x32xf32>
    %183 = arith.addf %177, %182 : vector<8x32xf32>
    %184 = vector.extract_strided_slice %164 {offsets = [24, 0], sizes = [8, 8], strides = [1, 1]} : vector<32x8xf32> to vector<8x8xf32>
    %185 = vector.extract_strided_slice %139 {offsets = [0, 88], sizes = [8, 8], strides = [1, 1]} : vector<8x96xf32> to vector<8x8xf32>
    %cst_68 = arith.constant dense<0.000000e+00> : vector<8x8xf32>
    %186 = tpu.matmul %184, %185, %cst_68 {dimension_numbers = #tpu.dot_dimension_numbers<[1], [0], [0], [1], [0, 0, 1, 1], [], []>} : vector<8x8xf32>, vector<8x8xf32>, vector<8x8xf32> -> vector<8x8xf32>
    %187 = vector.extract_strided_slice %130 {offsets = [24, 96], sizes = [8, 32], strides = [1, 1]} : vector<32x192xf32> to vector<8x32xf32>
    %cst_69 = arith.constant dense<0.000000e+00> : vector<8x32xf32>
    %188 = tpu.matmul %186, %187, %cst_69 {dimension_numbers = #tpu.dot_dimension_numbers<[1], [0], [0], [1], [0, 0, 1, 1], [], []>} : vector<8x8xf32>, vector<8x32xf32>, vector<8x32xf32> -> vector<8x32xf32>
    %189 = arith.addf %183, %188 : vector<8x32xf32>
    %190 = vector.extract_strided_slice %134 {offsets = [1, 0], sizes = [1, 32], strides = [1, 1]} : vector<8x128xf32> to vector<1x32xf32>
    %191 = vector.broadcast %190 : vector<1x32xf32> to vector<8x32xf32>
    %192 = arith.addf %189, %191 : vector<8x32xf32>
    %193 = arith.addf %128, %192 : vector<8x32xf32>
    %194 = vector.extract_strided_slice %134 {offsets = [4, 0], sizes = [1, 32], strides = [1, 1]} : vector<8x128xf32> to vector<1x32xf32>
    %195 = vector.extract_strided_slice %134 {offsets = [5, 0], sizes = [1, 32], strides = [1, 1]} : vector<8x128xf32> to vector<1x32xf32>
    %cst_70 = arith.constant dense<0.000000e+00> : vector<8xf32>
    %196 = vector.multi_reduction <add>, %193, %cst_70 [1] : vector<8x32xf32> to vector<8xf32>
    %197 = vector.shape_cast %196 : vector<8xf32> to vector<8x1xf32>
    %cst_71 = arith.constant 3.200000e+01 : f32
    %198 = vector.broadcast %cst_71 : f32 to vector<8x1xf32>
    %199 = arith.divf %197, %198 : vector<8x1xf32>
    %200 = vector.broadcast %199 : vector<8x1xf32> to vector<8x32xf32>
    %201 = arith.subf %193, %200 : vector<8x32xf32>
    %202 = arith.mulf %201, %201 : vector<8x32xf32>
    %cst_72 = arith.constant dense<0.000000e+00> : vector<8xf32>
    %203 = vector.multi_reduction <add>, %202, %cst_72 [1] : vector<8x32xf32> to vector<8xf32>
    %204 = vector.shape_cast %203 : vector<8xf32> to vector<8x1xf32>
    %cst_73 = arith.constant 3.200000e+01 : f32
    %205 = vector.broadcast %cst_73 : f32 to vector<8x1xf32>
    %206 = arith.divf %204, %205 : vector<8x1xf32>
    %cst_74 = arith.constant 9.99999974E-6 : f32
    %207 = vector.broadcast %cst_74 : f32 to vector<8x1xf32>
    %208 = arith.addf %206, %207 : vector<8x1xf32>
    %209 = math.rsqrt %208 : vector<8x1xf32>
    %210 = vector.broadcast %209 : vector<8x1xf32> to vector<8x32xf32>
    %211 = arith.mulf %201, %210 : vector<8x32xf32>
    %212 = vector.broadcast %194 : vector<1x32xf32> to vector<8x32xf32>
    %213 = arith.mulf %211, %212 : vector<8x32xf32>
    %214 = vector.broadcast %195 : vector<1x32xf32> to vector<8x32xf32>
    %215 = arith.addf %213, %214 : vector<8x32xf32>
    %216 = vector.extract_strided_slice %130 {offsets = [0, 128], sizes = [32, 64], strides = [1, 1]} : vector<32x192xf32> to vector<32x64xf32>
    %cst_75 = arith.constant dense<0.000000e+00> : vector<8x64xf32>
    %217 = tpu.matmul %215, %216, %cst_75 {dimension_numbers = #tpu.dot_dimension_numbers<[1], [0], [0], [1], [0, 0, 1, 1], [], []>} : vector<8x32xf32>, vector<32x64xf32>, vector<8x64xf32> -> vector<8x64xf32>
    %218 = vector.extract_strided_slice %134 {offsets = [2, 0], sizes = [1, 64], strides = [1, 1]} : vector<8x128xf32> to vector<1x64xf32>
    %219 = vector.broadcast %218 : vector<1x64xf32> to vector<8x64xf32>
    %220 = arith.addf %217, %219 : vector<8x64xf32>
    %cst_76 = arith.constant 0.000000e+00 : f32
    %221 = vector.broadcast %cst_76 : f32 to vector<8x64xf32>
    %222 = arith.maximumf %220, %221 : vector<8x64xf32>
    %cst_77 = arith.constant dense<0.000000e+00> : vector<8x32xf32>
    %223 = tpu.matmul %222, %132, %cst_77 {dimension_numbers = #tpu.dot_dimension_numbers<[1], [0], [0], [1], [0, 0, 1, 1], [], []>} : vector<8x64xf32>, vector<64x32xf32>, vector<8x32xf32> -> vector<8x32xf32>
    %224 = vector.extract_strided_slice %134 {offsets = [3, 0], sizes = [1, 32], strides = [1, 1]} : vector<8x128xf32> to vector<1x32xf32>
    %225 = vector.broadcast %224 : vector<1x32xf32> to vector<8x32xf32>
    %226 = arith.addf %223, %225 : vector<8x32xf32>
    %227 = arith.addf %215, %226 : vector<8x32xf32>
    %228 = vector.extract_strided_slice %134 {offsets = [6, 0], sizes = [1, 32], strides = [1, 1]} : vector<8x128xf32> to vector<1x32xf32>
    %229 = vector.extract_strided_slice %134 {offsets = [7, 0], sizes = [1, 32], strides = [1, 1]} : vector<8x128xf32> to vector<1x32xf32>
    %cst_78 = arith.constant dense<0.000000e+00> : vector<8xf32>
    %230 = vector.multi_reduction <add>, %227, %cst_78 [1] : vector<8x32xf32> to vector<8xf32>
    %231 = vector.shape_cast %230 : vector<8xf32> to vector<8x1xf32>
    %cst_79 = arith.constant 3.200000e+01 : f32
    %232 = vector.broadcast %cst_79 : f32 to vector<8x1xf32>
    %233 = arith.divf %231, %232 : vector<8x1xf32>
    %234 = vector.broadcast %233 : vector<8x1xf32> to vector<8x32xf32>
    %235 = arith.subf %227, %234 : vector<8x32xf32>
    %236 = arith.mulf %235, %235 : vector<8x32xf32>
    %cst_80 = arith.constant dense<0.000000e+00> : vector<8xf32>
    %237 = vector.multi_reduction <add>, %236, %cst_80 [1] : vector<8x32xf32> to vector<8xf32>
    %238 = vector.shape_cast %237 : vector<8xf32> to vector<8x1xf32>
    %cst_81 = arith.constant 3.200000e+01 : f32
    %239 = vector.broadcast %cst_81 : f32 to vector<8x1xf32>
    %240 = arith.divf %238, %239 : vector<8x1xf32>
    %cst_82 = arith.constant 9.99999974E-6 : f32
    %241 = vector.broadcast %cst_82 : f32 to vector<8x1xf32>
    %242 = arith.addf %240, %241 : vector<8x1xf32>
    %243 = math.rsqrt %242 : vector<8x1xf32>
    %244 = vector.broadcast %243 : vector<8x1xf32> to vector<8x32xf32>
    %245 = arith.mulf %235, %244 : vector<8x32xf32>
    %246 = vector.broadcast %228 : vector<1x32xf32> to vector<8x32xf32>
    %247 = arith.mulf %245, %246 : vector<8x32xf32>
    %248 = vector.broadcast %229 : vector<1x32xf32> to vector<8x32xf32>
    %249 = arith.addf %247, %248 : vector<8x32xf32>
    %250 = vector.extract_strided_slice %2 {offsets = [1, 0], sizes = [1, 32], strides = [1, 1]} : vector<8x128xf32> to vector<1x32xf32>
    %251 = vector.extract_strided_slice %2 {offsets = [2, 0], sizes = [1, 32], strides = [1, 1]} : vector<8x128xf32> to vector<1x32xf32>
    %cst_83 = arith.constant dense<0.000000e+00> : vector<8xf32>
    %252 = vector.multi_reduction <add>, %249, %cst_83 [1] : vector<8x32xf32> to vector<8xf32>
    %253 = vector.shape_cast %252 : vector<8xf32> to vector<8x1xf32>
    %cst_84 = arith.constant 3.200000e+01 : f32
    %254 = vector.broadcast %cst_84 : f32 to vector<8x1xf32>
    %255 = arith.divf %253, %254 : vector<8x1xf32>
    %256 = vector.broadcast %255 : vector<8x1xf32> to vector<8x32xf32>
    %257 = arith.subf %249, %256 : vector<8x32xf32>
    %258 = arith.mulf %257, %257 : vector<8x32xf32>
    %cst_85 = arith.constant dense<0.000000e+00> : vector<8xf32>
    %259 = vector.multi_reduction <add>, %258, %cst_85 [1] : vector<8x32xf32> to vector<8xf32>
    %260 = vector.shape_cast %259 : vector<8xf32> to vector<8x1xf32>
    %cst_86 = arith.constant 3.200000e+01 : f32
    %261 = vector.broadcast %cst_86 : f32 to vector<8x1xf32>
    %262 = arith.divf %260, %261 : vector<8x1xf32>
    %cst_87 = arith.constant 9.99999974E-6 : f32
    %263 = vector.broadcast %cst_87 : f32 to vector<8x1xf32>
    %264 = arith.addf %262, %263 : vector<8x1xf32>
    %265 = math.rsqrt %264 : vector<8x1xf32>
    %266 = vector.broadcast %265 : vector<8x1xf32> to vector<8x32xf32>
    %267 = arith.mulf %257, %266 : vector<8x32xf32>
    %268 = vector.broadcast %250 : vector<1x32xf32> to vector<8x32xf32>
    %269 = arith.mulf %267, %268 : vector<8x32xf32>
    %270 = vector.broadcast %251 : vector<1x32xf32> to vector<8x32xf32>
    %271 = arith.addf %269, %270 : vector<8x32xf32>
    %c0_88 = arith.constant 0 : index
    %c0_89 = arith.constant 0 : index
    %c0_90 = arith.constant 0 : index
    %272 = vector.load %arg7[%c0_88, %c0_89, %c0_90] : memref<1x8x32xf32, #tpu.memory_space<vmem>>, vector<1x8x32xf32>
    %273 = vector.shape_cast %272 : vector<1x8x32xf32> to vector<8x32xf32>
    %274 = vector.shape_cast %271 : vector<8x32xf32> to vector<1x8x32xf32>
    tpu.vector_store %arg7[%c0_88, %c0_89, %c0_90], %274 {strides = array<i32>} : memref<1x8x32xf32, #tpu.memory_space<vmem>>, vector<1x8x32xf32>,
    return
  }
  func.func @transform_0(%arg0: i32) -> (i32, i32, i32) {
    %c0_i32 = arith.constant 0 : i32
    %c0_i32_0 = arith.constant 0 : i32
    %c0_i32_1 = arith.constant 0 : i32
    return %arg0, %c0_i32, %c0_i32_0 : i32, i32, i32
  }
  func.func @transform_1(%arg0: i32) -> (i32, i32) {
    %c0_i32 = arith.constant 0 : i32
    %c0_i32_0 = arith.constant 0 : i32
    %c0_i32_1 = arith.constant 0 : i32
    return %c0_i32, %c0_i32_0 : i32, i32
  }
  func.func @transform_2(%arg0: i32) -> (i32, i32) {
    %c0_i32 = arith.constant 0 : i32
    %c0_i32_0 = arith.constant 0 : i32
    %c0_i32_1 = arith.constant 0 : i32
    return %c0_i32, %c0_i32_0 : i32, i32
  }
  func.func @transform_3(%arg0: i32) -> (i32, i32, i32) {
    %c0_i32 = arith.constant 0 : i32
    %c0_i32_0 = arith.constant 0 : i32
    %c0_i32_1 = arith.constant 0 : i32
    %c0_i32_2 = arith.constant 0 : i32
    return %c0_i32, %c0_i32_0, %c0_i32_1 : i32, i32, i32
  }
  func.func @transform_4(%arg0: i32) -> (i32, i32, i32) {
    %c0_i32 = arith.constant 0 : i32
    %c0_i32_0 = arith.constant 0 : i32
    %c0_i32_1 = arith.constant 0 : i32
    %c0_i32_2 = arith.constant 0 : i32
    return %c0_i32, %c0_i32_0, %c0_i32_1 : i32, i32, i32
  }
  func.func @transform_5(%arg0: i32) -> (i32, i32, i32) {
    %c0_i32 = arith.constant 0 : i32
    %c0_i32_0 = arith.constant 0 : i32
    %c0_i32_1 = arith.constant 0 : i32
    %c0_i32_2 = arith.constant 0 : i32
    return %c0_i32, %c0_i32_0, %c0_i32_1 : i32, i32, i32
  }
  func.func @transform_6(%arg0: i32) -> (i32, i32, i32) {
    %c0_i32 = arith.constant 0 : i32
    %c0_i32_0 = arith.constant 0 : i32
    %c0_i32_1 = arith.constant 0 : i32
    return %arg0, %c0_i32, %c0_i32_0 : i32, i32, i32
  }
}

</mosaic_0001>

<bundles_post_ra>
// kernel: forward.1
= control target key start
LH: loop header
LB: loop body
LE: loop exit
PB: predicated region body
PF: predicated region fallthrough
CT: control target
= control target key end

     0   :  { %11 = vsyncpa [#allocation3], 0  ;;  %s4120_s0 = inlined_call_operand.vmem [shape: f32[2,16,8], index: 0, kind: input, shape index: {}]   ;;  %s4121_s1 = inlined_call_operand.vmem [shape: f32[16,32], index: 1, kind: input, shape index: {}]   ;;  %s4122_s2 = inlined_call_operand.vmem [shape: f32[8,128], index: 2, kind: input, shape index: {}]   ;;  %s4123_s3 = inlined_call_operand.hbm [shape: f32[2,32,192], index: 3, kind: input, shape index: {}]   ;;  %s4124_s4 = inlined_call_operand.hbm [shape: f32[2,64,32], index: 4, kind: input, shape index: {}]   ;;  %s4125_s5 = inlined_call_operand.vmem [shape: f32[2,8,128], index: 5, kind: input, shape index: {}]   ;;  %s4126_s6 = inlined_call_operand.vmem [shape: f32[2,8,32], index: 6, kind: output, shape index: {}]  }
   0x1   :  { %12 = vsyncpa [#allocation5], 0  ;;  %s3674_s21 = smov 0  }
   0x2 LB: > { %s3618_s22 = smov [#allocation2]   ;;  %s3680_s24 = sadd.s32 4294967295, %s3616_s21   ;;  %s3616_s21 = sphi %s3674_s21, %s18_s21  }
   0x3   : > { %s198_s23 = sshll.u32 %s3618_s22, 4  ;;  %p3053_p0 = scmp.ge.s32.totalorder %s3616_s21, 1  ;;  %s199_s23 = int_to_ptr.vmem [resolvable:$true] %s198_s23 }
   0x4   : > { %p180_p1 = scmp.lt.s32.totalorder %s3616_s21, 3  ;;  %p4127_p3 = scmp.eq.s32.totalorder %s3680_s24, 0 }
   0x5   : > { %s3619_s26 = smov [#allocation4]   ;;  %s3546_s7 = scalar_lea.hbm %s4123_s3, 2048 }
   0x6   : > { %p3684_p2 = pnand %p3053_p0, %p180_p1  ;;  %s211_s27 = sshll.u32 %s3619_s26, 4  ;;  %s3697_s27 = int_to_ptr.vmem [resolvable:$true] %s211_s27 }
   0x7   : > { %p3547_p6 = scmp.ne.s32.totalorder %s4123_s3, %s3546_s7  ;;  %p3553_p10 = scmp.lt.u32.totalorder %s3546_s7, %s4123_s3 }
   0x8   : > { %s4129_s25 = scalar_select %p3684_p2, 1, 0 }
   0x9   : > { %p3463_p4 = pneg %p3684_p2 }
   0xb   : > { %p3693_p5 = pnand %p4127_p3, %p3463_p4 }
   0xd   : > { %p3548_p7 = pneg %p3693_p5 }
   0xf   : > { %p3549_p8 = pnand %p3548_p7, %p3547_p6 }
  0x11   : > { %p3550_p9 = pneg %p3549_p8 }
  0x13   : > { %p3555_p11 = pnand %p3553_p10, %p3550_p9 }
  0x15   : > { %3558 = shalt.err (!%p3555_p11)
}
  0x16   : > { %s3559_s12 = scalar_lea.vmem %s199_s23, 2048  ;;  %p3567_p1 = scmp.lt.s32.totalorder %s199_s23, %s199_s23 }
  0x17   : > { %p3560_p12 = scmp.ne.s32.totalorder %s199_s23, %s3559_s12  ;;  %p3568_p4 = scmp.lt.s32.totalorder %s3559_s12, %s3559_s12 }
  0x19   : > { %p3562_p13 = pnand %p3560_p12, %p3548_p7  ;;  %p3569_p3 = por %p3568_p4, %p3567_p1 }
  0x1b   : > { %p3563_p0 = pneg %p3562_p13 }
  0x1d   : > { %p3570_p2 = pnand %p3569_p3, %p3563_p0 }
  0x1f   : > { %3573 = shalt.err (!%p3570_p2)
}
  0x20   : > { %s3620_s13 = smov 256   ;;  %s3621_s14 = smov 16  }
  0x21   : > { %3466 = dma.hbm_to_vmem [thread:$0]  (!%p3693_p5), %s4123_s3, 2048, %s199_s23, [#allocation3], %s3620_s13, %s3620_s13, %s3621_s14  }
  0x22   : > { %s3574_s19 = scalar_lea.hbm %s4124_s4, 2048 }
  0x23   : > { %p3575_p6 = scmp.ne.s32.totalorder %s4124_s4, %s3574_s19  ;;  %p3581_p8 = scmp.lt.u32.totalorder %s3574_s19, %s4124_s4 }
  0x25   : > { %p3577_p2 = pnand %p3575_p6, %p3548_p7 }
  0x27   : > { %p3578_p3 = pneg %p3577_p2 }
  0x29   : > { %p3583_p9 = pnand %p3581_p8, %p3578_p3 }
  0x2b   : > { %3586 = shalt.err (!%p3583_p9)
}
  0x2c   : > { %s3587_s23 = scalar_lea.vmem %s3697_s27, 2048  ;;  %p3595_p13 = scmp.lt.s32.totalorder %s3697_s27, %s3697_s27 }
  0x2d   : > { %p3588_p10 = scmp.ne.s32.totalorder %s3697_s27, %s3587_s23  ;;  %p3596_p0 = scmp.lt.s32.totalorder %s3587_s23, %s3587_s23 }
  0x2f   : > { %p3590_p11 = pnand %p3588_p10, %p3548_p7  ;;  %p3597_p1 = por %p3596_p0, %p3595_p13 }
  0x31   : > { %p3591_p12 = pneg %p3590_p11 }
  0x33   : > { %p3598_p4 = pnand %p3597_p1, %p3591_p12 }
  0x35   : > { %3601 = shalt.err (!%p3598_p4)
}
  0x36   : > { %s3622_s30 = smov 128   ;;  %s3623_s7 = smov 8  }
  0x37   : > { %3469 = dma.hbm_to_vmem [thread:$0]  (!%p3693_p5), %s4124_s4, 2048, %s3697_s27, [#allocation5], %s3622_s30, %s3622_s30, %s3623_s7  }
  0x38   : > { %p4131_p6 = scmp.ne.s32.totalorder %s4129_s25, 0 }
  0x39   : > { %p4132_p7 = scmp.eq.s32.totalorder (!%p4131_p6), %s3680_s24, 0 }
  0x3a   : > { %238 = sbr.rel (%p4131_p6) target bundleno = 5873 (0x16f1), region = 44 }
  0x41   : > { %3607 = dma.done.wait (%p4132_p7), [#allocation3], 2048   ;;  %p4133_p2 = pmov %p4132_p7 }
  0x43   : > { %3609 = vsyncadd (%p4133_p2), [#allocation3], 4294965248  ;;  %p4134_p3 = pmov %p4133_p2 }
  0x44   : > { %p4135_p8 = pmov %p4133_p2 }
  0x45   : > { %3611 = dma.done.wait (%p4134_p3), [#allocation5], 2048  }
  0x46   : > { %3613 = vsyncadd (%p4135_p8), [#allocation5], 4294965248  ;;  %p271_p9 = scmp.lt.s32.totalorder %s3680_s24, 1  ;;  %v3624_v0 = vmov 0.0|0.0   ;;  %vm3625_vm0 = vmmov 0   ;;  %v3626_v1 = vmov 0.0   ;;  %v285_v14 = vlaneseq }
  0x47   : > { %3404 = vmatprep.subr.bf16.mxu1 %v3624_v0  ;;  %3199 = vmatprep.mubr.msk.f32.mxu1 %vm3625_vm0, %v3626_v1  ;;  %v283_v3 = vld [vmem:[%s4121_s1] sm:$0xff]  ;;  %v284_v4 = vld [vmem:[%s4121_s1 + $0x8] sm:$0xff]  ;;  %v3779_v8 = vld [vmem:[#allocation2 + $0x10] sm:$0xff]  ;;  %vm321_vm1 = vcmask 130048   ;;  %vm416_vm2 = vcmask 261120   ;;  %s3627_s19 = smov 120  }
  0x48   : > { %s4137_s24 = smov (!%p271_p9, %s3680_s24), 1  ;;  %3213 = vmatprep.subr.mxu0 %v3626_v1  ;;  %3215 = vmatprep.mubr.msk.f32.mxu0 %vm3625_vm0, %v3626_v1  ;;  %v3405_v6 = vpack.c.bf16 %v284_v4, %v283_v3  ;;  %v3777_v7 = vld [vmem:[#allocation2] sm:$0xff]  ;;  %v3788_v12 = vld [vmem:[#allocation2 + $0x30] sm:$0xff]  ;;  %v3793_v15 = vshrl.u32 %v285_v14, 7  ;;  %s3628_s20 = smov 96   ;;  %vm493_vm3 = vcmask 64512  }
  0x49   : > { %s3105_s25 = sshll.u32 %s4137_s24, 4  ;;  %v3408_v9 = vpack.c.bf16 %v3779_v8, %v3777_v7  ;;  %v3786_v11 = vld [vmem:[#allocation2 + $0x20] sm:$0xff]  ;;  %s3629_s22 = smov 88   ;;  %vm1576_vm4 = vcmask 523264  }
  0x4a   : > { %s275_s10 = scalar_lea.vmem %s4120_s0, %s3105_s25  ;;  %3406 = vmatpush3.bf16.msra.mxu1 %v3405_v6  ;;  %v3411_v13 = vpack.c.bf16 %v3788_v12, %v3786_v11  ;;  %v3796_v16 = vsub.s32 0, %v3793_v15  ;;  %v282_v17 = vld [vmem:[%s4122_s2] sm:$0xff]  ;;  %s3630_s26 = smov 80  }
  0x4b   : > { %v280_v2 = vld [vmem:[%s275_s10] sm:$0xff]  ;;  %v281_v5 = vld [vmem:[%s275_s10 + $0x8] sm:$0xff]  ;;  %3407 = vmatprep.subr.bf16.mxu1 %v3624_v0  ;;  %s3631_s29 = smov 112   ;;  %s3632_s23 = smov 72  }
  0x4c   : > { %289 = vxpose.xlu0.b32.start [1/2] (short) (narrow) %v280_v2, 8  ;;  %v288_v18 = vrot.slane %v282_v17, %v3796_v16  ;;  %v3811_v22 = vld [vmem:[%s4125_s5] sm:$0xff]  ;;  %s3633_s30 = smov 104   ;;  %s3634_s7 = smov 56  }
  0x4d   : > { %v415_v23 = vrot.slane %v3811_v22, %v3796_v16  ;;  %s3635_s8 = smov 32   ;;  %s3636_s9 = smov 64  }
  0x4e   : > { %s3637_s25 = smov 48   ;;  %s3638_s27 = smov 40  }
  0x4f   : > { %s3062_s13 = sshll.u32 %s4137_s24, 3 }
  0x50   : > { %290 = vxpose.xlu0.b32.end [2/2] (short) (narrow) %v281_v5, 8  ;;  %s279_s16 = scalar_lea.vmem %s4126_s6, %s3062_s13 }
  0xcc   : > { %v305_v10 = vpop.trf.xlu0 }
  0xcd   : > { %3200 = vmatmul.mubr.msk.f32.vlgmr.msra.gmra.mrb[0].mxu1 %vm321_vm1, %v305_v10 }
  0xce   : > { %3409 = vmatpush3.bf16.msra.mxu1 %v3408_v9  ;;  %3210 = vmatprep.mubr.msk.f32.mxu1 %vm3625_vm0, %v3626_v1 }
  0xcf   : > { %3410 = vmatprep.subr.bf16.mxu1 %v3624_v0 }
  0xd2   : > { %3412 = vmatpush3.bf16.msra.mxu1 %v3411_v13 }
  0xd3   : > { %3223 = vmatprep.subr.mxu1 %v3626_v1 }
 0x1a0   : > { %v391_v19 = vpop.f32.mrb[0].mxu1 }
 0x1a1   : > { %v3802_v20 = vadd.f32 %v391_v19, %v288_v18  ;;  %v3201_v21 = vpop.f32.mrb[1].mxu1 }
 0x1a3   : > { %3211 = vmatmul.mubr.msk.f32.vlgmr.msra.gmra.mrb[2].mxu1 %vm416_vm2, %v3802_v20 }
 0x1a4   : > { %3225 = vmatprep.mubr.msk.f32.mxu1 %vm3625_vm0, %v3626_v1 }
 0x276   : > { %v486_v24 = vpop.f32.mrb[2].mxu1 }
 0x277   : > { %v3815_v25 = vadd.f32 %v486_v24, %v415_v23  ;;  %v3212_v26 = vpop.f32.mrb[3].mxu1 }
 0x279   : > { %568 = vrot.lane.b32.xlu0 %v3815_v25, %s3627_s19  ;;  %491 = vrot.lane.b32.xlu1 %v3815_v25, %s3628_s20 }
 0x27d   : > { %570 = vrot.lane.b32.xlu1 %v3815_v25, %s3629_s22 }
 0x281   : > { %648 = vrot.lane.b32.xlu1 %v3815_v25, %s3630_s26 }
 0x285   : > { %646 = vrot.lane.b32.xlu1 %v3815_v25, %s3631_s29 }
 0x289   : > { %726 = vrot.lane.b32.xlu1 %v3815_v25, %s3632_s23 }
 0x28d   : > { %724 = vrot.lane.b32.xlu1 %v3815_v25, %s3633_s30 }
 0x2eb   : > { %v492_v27 = vpop.permute.xlu1 %491  ;;  %v569_v29 = vpop.permute.xlu0 %568 }
 0x2ec   : > { %3214 = vmatpush3.xpose.msk.msra.mxu0 %vm493_vm3, %v492_v27 }
 0x2ed   : > { %3218 = vmatprep.subr.mxu0 %v3626_v1 }
 0x2ef   : > { %3216 = vmatmul.mubr.msk.f32.vlgmr.msra.gmra.mrb[0].mxu0 %vm493_vm3, %v3815_v25  ;;  %v571_v28 = vpop.permute.xlu1 %570 }
 0x2f0   : > { %3219 = vmatpush3.xpose.msk.msra.mxu0 %vm493_vm3, %v571_v28  ;;  %3220 = vmatprep.mubr.msk.f32.mxu0 %vm3625_vm0, %v3626_v1 }
 0x2f1   : > { %3228 = vmatprep.subr.mxu0 %v3626_v1 }
 0x2f3   : > { %3221 = vmatmul.mubr.msk.f32.vlgmr.msra.gmra.mrb[2].mxu0 %vm493_vm3, %v569_v29  ;;  %v649_v30 = vpop.permute.xlu1 %648 }
 0x2f4   : > { %3224 = vmatpush3.xpose.msk.msra.mxu1 %vm493_vm3, %v649_v30  ;;  %3230 = vmatprep.mubr.msk.f32.mxu0 %vm3625_vm0, %v3626_v1 }
 0x2f5   : > { %3233 = vmatprep.subr.mxu1 %v3626_v1 }
 0x2f7   : > { %v647_v31 = vpop.permute.xlu1 %646 }
 0x2f8   : > { %3226 = vmatmul.mubr.msk.f32.vlgmr.msra.gmra.mrb[4].mxu1 %vm493_vm3, %v647_v31 }
 0x2f9   : > { %3235 = vmatprep.mubr.msk.f32.mxu1 %vm3625_vm0, %v3626_v1 }
 0x2fb   : > { %v727_v32 = vpop.permute.xlu1 %726 }
 0x2fc   : > { %3229 = vmatpush3.xpose.msk.msra.mxu0 %vm493_vm3, %v727_v32 }
 0x2fd   : > { %3238 = vmatprep.subr.mxu0 %v3626_v1 }
 0x2ff   : > { %v725_v33 = vpop.permute.xlu1 %724 }
 0x300   : > { %3231 = vmatmul.mubr.msk.f32.vlgmr.msra.gmra.mrb[4].mxu0 %vm493_vm3, %v725_v33 }
 0x301   : > { %3240 = vmatprep.mubr.msk.f32.mxu0 %vm3625_vm0, %v3626_v1 }
 0x3c2   : > { %v564_v34 = vpop.f32.mrb[0].mxu0 }
 0x3c3   : > { %v3217_v35 = vpop.f32.mrb[1].mxu0  ;;  %v802_v44 = vmul.f32 0.35355338, %v564_v34 }
 0x3c5   : > { %v806_v45 = vsel %vm493_vm3, %v802_v44, -inf }
 0x3c6   : > { %v642_v36 = vpop.f32.mrb[2].mxu0 }
 0x3c7   : > { %v803_v37 = vmul.f32 0.35355338, %v642_v36  ;;  %v3222_v38 = vpop.f32.mrb[3].mxu0 }
 0x3c9   : > { %v809_v39 = vsel %vm493_vm3, %v803_v37, -inf }
 0x3ca   : > { %810 = vmax.xlane.f32.xlu1 %v809_v39 }
 0x3cb   : > { %v720_v40 = vpop.f32.mrb[4].mxu1 }
 0x3cc   : > { %v3227_v41 = vpop.f32.mrb[5].mxu1  ;;  %v804_v51 = vmul.f32 0.35355338, %v720_v40 }
 0x3ce   : > { %v812_v54 = vsel %vm493_vm3, %v804_v51, -inf }
 0x3d3   : > { %v798_v42 = vpop.f32.mrb[4].mxu0 }
 0x3d4   : > { %v3232_v43 = vpop.f32.mrb[5].mxu0  ;;  %v805_v53 = vmul.f32 0.35355338, %v798_v42 }
 0x3d6   : > { %v815_v55 = vsel %vm493_vm3, %v805_v53, -inf }
 0x3db   : > { %926 = vrot.lane.b32.xlu1 %v3815_v25, %s3634_s7 }
 0x3ff   : > { %807 = vmax.xlane.f32.xlu1 %v806_v45  ;;  %v3909_v45 = vsub.s32 1, %v3793_v15 }
 0x410   : > { %1003 = vrot.lane.b32.xlu1 %v3779_v8, %s3635_s8 }
 0x414   : > { %1233 = vrot.lane.b32.xlu1 %v3786_v11, %s3635_s8 }
 0x457   : > { %v811_v46 = vpop.xlane.xlu1 %810 }
 0x458   : > { %v819_v47 = vsub.f32 %v803_v37, %v811_v46 }
 0x45a   : > { %v824_v48 = vmul.f32 1.442695, %v819_v47 }
 0x45b   : > { %v927_v49 = vpop.permute.xlu1 %926 }
 0x45c   : > { %3503 = vpow2.f32 %v824_v48  ;;  %3239 = vmatpush3.msra.mxu0 %v927_v49  ;;  %v1467_v49 = vrot.slane %v3811_v22, %v3909_v45 }
 0x45d   : > { %3248 = vmatprep.subr.mxu0 %v3626_v1 }
 0x466   : > { %v3504_v50 = vpop.eup %3503 }
 0x467   : > { %v833_v52 = vsel %vm493_vm3, %v3504_v50, 0.0 }
 0x468   : > { %834 = vadd.xlane.f32.xlu0 %v833_v52 }
 0x46c   : > { %813 = vmax.xlane.f32.xlu0 %v812_v54 }
 0x470   : > { %816 = vmax.xlane.f32.xlu0 %v815_v55 }
 0x48c   : > { %v808_v56 = vpop.xlane.xlu1 %807 }
 0x48d   : > { %v818_v57 = vsub.f32 %v802_v44, %v808_v56 }
 0x48f   : > { %v822_v58 = vmul.f32 1.442695, %v818_v57 }
 0x490   : > { %v1004_v23 = vpop.permute.xlu1 %1003 }
 0x491   : > { %3505 = vpow2.f32 %v822_v58 }
 0x494   : > { %v1234_v32 = vpop.permute.xlu1 %1233 }
 0x49b   : > { %v3506_v59 = vpop.eup %3505 }
 0x49c   : > { %v830_v60 = vsel %vm493_vm3, %v3506_v59, 0.0 }
 0x49d   : > { %831 = vadd.xlane.f32.xlu0 %v830_v60 }
 0x4f5   : > { %v835_v61 = vpop.xlane.xlu0 %834 }
 0x4f6   : > { %3507 = vrcp.f32 %v835_v61  ;;  %v396_v61 = vld [vmem:[#allocation2 + $0x8] sm:$0xff] }
 0x4f9   : > { %v814_v62 = vpop.xlane.xlu0 %813 }
 0x4fa   : > { %v820_v63 = vsub.f32 %v804_v51, %v814_v62  ;;  %v398_v62 = vld [vmem:[#allocation2 + $0x18] sm:$0xff] }
 0x4fc   : > { %v826_v2 = vmul.f32 1.442695, %v820_v63  ;;  %v3414_v63 = vpack.c.bf16 %v398_v62, %v396_v61 }
 0x4fd   : > { %v817_v8 = vpop.xlane.xlu0 %816 }
 0x4fe   : > { %3509 = vpow2.f32 %v826_v2  ;;  %v821_v9 = vsub.f32 %v805_v53, %v817_v8  ;;  %v400_v2 = vld [vmem:[#allocation2 + $0x28] sm:$0xff] }
 0x500   : > { %v3508_v3 = vpop.eup %3507  ;;  %v828_v10 = vmul.f32 1.442695, %v821_v9  ;;  %v406_v9 = vld [vmem:[#allocation4 + $0x18] sm:$0xff] }
 0x501   : > { %v847_v4 = vmul.f32 %v3508_v3, %v3504_v50  ;;  %v402_v3 = vld [vmem:[#allocation2 + $0x38] sm:$0xff] }
 0x502   : > { %3511 = vpow2.f32 %v828_v10 }
 0x503   : > { %3241 = vmatmul.mubr.msk.f32.vlgmr.msra.gmra.mrb[6].mxu0 %vm493_vm3, %v847_v4  ;;  %v3417_v4 = vpack.c.bf16 %v402_v3, %v400_v2 }
 0x504   : > { %3250 = vmatprep.mubr.msk.f32.mxu0 %vm3625_vm0, %v3626_v1 }
 0x508   : > { %v3510_v5 = vpop.eup %3509 }
 0x509   : > { %v836_v6 = vsel %vm493_vm3, %v3510_v5, 0.0 }
 0x50a   : > { %837 = vadd.xlane.f32.xlu0 %v836_v6  ;;  %v405_v6 = vld [vmem:[#allocation4 + $0x10] sm:$0xff] }
 0x50b   : > { %v3423_v10 = vpack.c.bf16 %v406_v9, %v405_v6 }
 0x50c   : > { %v3512_v11 = vpop.eup %3511 }
 0x50d   : > { %v839_v13 = vsel %vm493_vm3, %v3512_v11, 0.0 }
 0x520   : > { %850 = vrot.lane.b32.xlu0 %v3815_v25, %s3636_s9 }
 0x524   : > { %1156 = vrot.lane.b32.xlu0 %v3815_v25, %s3637_s25 }
 0x52a   : > { %v832_v14 = vpop.xlane.xlu0 %831 }
 0x52b   : > { %3513 = vrcp.f32 %v832_v14 }
 0x535   : > { %v3514_v18 = vpop.eup %3513 }
 0x536   : > { %v846_v19 = vmul.f32 %v3514_v18, %v3506_v59 }
 0x543   : > { %840 = vadd.xlane.f32.xlu0 %v839_v13  ;;  %v408_v13 = vld [vmem:[#allocation4 + $0x28] sm:$0xff] }
 0x559   : > { %1310 = vrot.lane.b32.xlu0 %v3815_v25, %s3638_s27 }
 0x55d   : > { %1080 = vrot.lane.b32.xlu0 %v3777_v7, %s3635_s8 }
 0x561   : > { %1387 = vrot.lane.b32.xlu0 %v3788_v12, %s3635_s8 }
 0x597   : > { %v838_v17 = vpop.xlane.xlu0 %837 }
 0x598   : > { %3515 = vrcp.f32 %v838_v17 }
 0x59b   : > { %v851_v21 = vpop.permute.xlu0 %850 }
 0x59c   : > { %3234 = vmatpush3.msra.mxu1 %v851_v21  ;;  %v1486_v21 = vsub.s32 4, %v3793_v15 }
 0x59d   : > { %3236 = vmatmul.mubr.msk.f32.vlgmr.msra.gmra.mrb[6].mxu1 %vm493_vm3, %v846_v19  ;;  %3243 = vmatprep.subr.mxu1 %v3626_v1 }
 0x59e   : > { %3244 = vmatpush3.msra.mxu1 %v1004_v23  ;;  %3245 = vmatprep.mubr.msk.f32.mxu1 %vm3625_vm0, %v3626_v1  ;;  %v1491_v23 = vsub.s32 5, %v3793_v15 }
 0x59f   : > { %3253 = vmatprep.subr.mxu1 %v3626_v1  ;;  %v1157_v7 = vpop.permute.xlu0 %1156 }
 0x5a2   : > { %v3516_v25 = vpop.eup %3515 }
 0x5a3   : > { %v848_v29 = vmul.f32 %v3516_v25, %v3510_v5  ;;  %v404_v5 = vld [vmem:[#allocation4 + $0x8] sm:$0xff]  ;;  %v1492_v25 = vrot.slane %v3811_v22, %v1491_v23 }
 0x5d0   : > { %v841_v12 = vpop.xlane.xlu0 %840 }
 0x5d1   : > { %3517 = vrcp.f32 %v841_v12 }
 0x5d4   : > { %v1311_v24 = vpop.permute.xlu0 %1310 }
 0x5d6   : > { %v998_v26 = vpop.f32.mrb[6].mxu0 }
 0x5d7   : > { %v3242_v27 = vpop.f32.mrb[7].mxu0  ;;  %3246 = vmatmul.mubr.msk.f32.vlgmr.msra.gmra.mrb[8].mxu1 %vm493_vm3, %v998_v26 }
 0x5d8   : > { %3254 = vmatpush3.msra.mxu1 %v1157_v7  ;;  %3255 = vmatprep.mubr.msk.f32.mxu1 %vm3625_vm0, %v3626_v1  ;;  %v1081_v28 = vpop.permute.xlu0 %1080  ;;  %v1487_v7 = vrot.slane %v3811_v22, %v1486_v21 }
 0x5d9   : > { %3263 = vmatprep.subr.mxu1 %v3626_v1  ;;  %3249 = vmatpush3.msra.mxu0 %v1081_v28  ;;  %v409_v28 = vld [vmem:[#allocation4 + $0x30] sm:$0xff] }
 0x5da   : > { %3258 = vmatprep.subr.mxu0 %v3626_v1 }
 0x5db   : > { %v3518_v30 = vpop.eup %3517  ;;  %3256 = vmatmul.mubr.msk.f32.vlgmr.msra.gmra.mrb[10].mxu1 %vm493_vm3, %v848_v29  ;;  %v410_v29 = vld [vmem:[#allocation4 + $0x38] sm:$0xff] }
 0x5dc   : > { %v849_v31 = vmul.f32 %v3518_v30, %v3512_v11  ;;  %3264 = vmatpush3.msra.mxu1 %v1311_v24  ;;  %3265 = vmatprep.mubr.msk.f32.mxu1 %vm3625_vm0, %v3626_v1  ;;  %v1388_v37 = vpop.permute.xlu0 %1387  ;;  %v407_v11 = vld [vmem:[#allocation4 + $0x20] sm:$0xff]  ;;  %v3429_v30 = vpack.c.bf16 %v410_v29, %v409_v28 }
 0x5dd   : > { %3413 = vmatprep.subr.bf16.mxu1 %v3624_v0  ;;  %v3426_v14 = vpack.c.bf16 %v408_v13, %v407_v11 }
 0x5df   : > { %3266 = vmatmul.mubr.msk.f32.vlgmr.msra.gmra.mrb[12].mxu1 %vm493_vm3, %v849_v31  ;;  %v3934_v31 = vsub.s32 2, %v3793_v15 }
 0x5e0   : > { %3281 = vmatprep.mubr.msk.f32.mxu1 %vm3625_vm0, %v3626_v1  ;;  %3415 = vmatpush3.bf16.msra.mxu1 %v3414_v63 }
 0x5e1   : > { %3416 = vmatprep.subr.bf16.mxu1 %v3624_v0 }
 0x5e4   : > { %3418 = vmatpush3.bf16.msra.mxu1 %v3417_v4 }
 0x5e5   : > { %3431 = vmatprep.subr.bf16.mxu1 %v3624_v0 }
 0x670   : > { %v922_v33 = vpop.f32.mrb[6].mxu1 }
 0x671   : > { %v3237_v34 = vpop.f32.mrb[7].mxu1  ;;  %3251 = vmatmul.mubr.msk.f32.vlgmr.msra.gmra.mrb[8].mxu0 %vm493_vm3, %v922_v33 }
 0x672   : > { %3259 = vmatpush3.msra.mxu0 %v1234_v32  ;;  %3260 = vmatprep.mubr.msk.f32.mxu0 %vm3625_vm0, %v3626_v1  ;;  %v1497_v32 = vrot.slane %v3811_v22, %v3934_v31 }
 0x673   : > { %3268 = vmatprep.subr.mxu0 %v3626_v1 }
 0x6aa   : > { %v1075_v35 = vpop.f32.mrb[8].mxu1 }
 0x6ab   : > { %v3247_v36 = vpop.f32.mrb[9].mxu1 }
 0x6ae   : > { %v1228_v38 = vpop.f32.mrb[10].mxu1 }
 0x6af   : > { %v3257_v39 = vpop.f32.mrb[11].mxu1  ;;  %3261 = vmatmul.mubr.msk.f32.vlgmr.msra.gmra.mrb[10].mxu0 %vm493_vm3, %v1228_v38 }
 0x6b0   : > { %3269 = vmatpush3.msra.mxu0 %v1388_v37  ;;  %3270 = vmatprep.mubr.msk.f32.mxu0 %vm3625_vm0, %v3626_v1  ;;  %v1574_v37 = vsub.s32 3, %v3793_v15 }
 0x6b1   : > { %3419 = vmatprep.subr.bf16.mxu0 %v3624_v0 }
 0x6b2   : > { %v1382_v40 = vpop.f32.mrb[12].mxu1  ;;  %v1575_v38 = vrot.slane %v3811_v22, %v1574_v37 }
 0x6b3   : > { %v3267_v41 = vpop.f32.mrb[13].mxu1  ;;  %3271 = vmatmul.mubr.msk.f32.vlgmr.msra.gmra.mrb[12].mxu0 %vm493_vm3, %v1382_v40 }
 0x6b4   : > { %3300 = vmatprep.mubr.msk.f32.mxu0 %vm3625_vm0, %v3626_v1 }
 0x744   : > { %v1152_v42 = vpop.f32.mrb[8].mxu0 }
 0x745   : > { %v1153_v43 = vadd.f32 %v1152_v42, %v1075_v35  ;;  %v3252_v44 = vpop.f32.mrb[9].mxu0 }
 0x782   : > { %v1305_v46 = vpop.f32.mrb[10].mxu0 }
 0x783   : > { %v1309_v47 = vadd.f32 %v1305_v46, %v1153_v43  ;;  %v3262_v48 = vpop.f32.mrb[11].mxu0 }
 0x786   : > { %v1459_v50 = vpop.f32.mrb[12].mxu0 }
 0x787   : > { %v1463_v51 = vadd.f32 %v1459_v50, %v1309_v47  ;;  %v3272_v52 = vpop.f32.mrb[13].mxu0  ;;  %v3947_v50 = vld [vmem:[#allocation2 + $0x40] sm:$0xff] }
 0x789   : > { %v1468_v53 = vadd.f32 %v1467_v49, %v1463_v51  ;;  %v3949_v51 = vld [vmem:[#allocation2 + $0x50] sm:$0xff] }
 0x78a   : > { %v3432_v52 = vpack.c.bf16 %v3949_v51, %v3947_v50 }
 0x78b   : > { %v1469_v54 = vadd.f32 %v1468_v53, %v3802_v20  ;;  %v403_v20 = vld [vmem:[#allocation4] sm:$0xff] }
 0x78c   : > { %v3420_v8 = vpack.c.bf16 %v404_v5, %v403_v20  ;;  %v3953_v53 = vld [vmem:[#allocation2 + $0x60] sm:$0xff]  ;;  %v3978_v20 = vld [vmem:[%s4125_s5 + $0x8] sm:$0xff] }
 0x78d   : > { %v1470_v55 = vsel %vm416_vm2, %v1469_v54, 0.0  ;;  %v1697_v5 = vrot.slane %v3978_v20, %v3796_v16 }
 0x78e   : > { %1471 = vadd.xlane.f32.xlu1 %v1470_v55  ;;  %3421 = vmatpush3.bf16.msra.mxu0 %v3420_v8 }
 0x78f   : > { %3422 = vmatprep.subr.bf16.mxu0 %v3624_v0 }
 0x792   : > { %3424 = vmatpush3.bf16.msra.mxu0 %v3423_v10 }
 0x793   : > { %3425 = vmatprep.subr.bf16.mxu0 %v3624_v0 }
 0x796   : > { %3427 = vmatpush3.bf16.msra.mxu0 %v3426_v14 }
 0x797   : > { %3428 = vmatprep.subr.bf16.mxu0 %v3624_v0 }
 0x79a   : > { %3430 = vmatpush3.bf16.msra.mxu0 %v3429_v30 }
 0x79b   : > { %3319 = vmatprep.subr.mxu0 %v3626_v1 }
 0x81b   : > { %v1472_v56 = vpop.xlane.xlu1 %1471 }
 0x81c   : > { %v1474_v57 = vmul.f32 0.03125, %v1472_v56 }
 0x81e   : > { %v1475_v58 = vsub.f32 %v1469_v54, %v1474_v57  ;;  %v3955_v54 = vld [vmem:[#allocation2 + $0x70] sm:$0xff] }
 0x81f   : > { %v3435_v55 = vpack.c.bf16 %v3955_v54, %v3953_v53 }
 0x820   : > { %v1476_v59 = vmul.f32 %v1475_v58, %v1475_v58 }
 0x822   : > { %v1477_v60 = vsel %vm416_vm2, %v1476_v59, 0.0  ;;  %v1666_v59 = vsub.s32 6, %v3793_v15 }
 0x823   : > { %1478 = vadd.xlane.f32.xlu0 %v1477_v60  ;;  %v1671_v60 = vsub.s32 7, %v3793_v15  ;;  %v3545_v15 = vld [vmem:[%s4122_s2] sm:$0xff] }
 0x824   : > { %v1667_v61 = vrot.slane %v3811_v22, %v1666_v59 }
 0x825   : > { %v1672_v2 = vrot.slane %v3811_v22, %v1671_v60 }
 0x8b0   : > { %v1479_v17 = vpop.xlane.xlu0 %1478 }
 0x8b1   : > { %v1480_v18 = vmul.f32 0.03125, %v1479_v17 }
 0x8b3   : > { %v1481_v19 = vadd.f32 1e-05, %v1480_v18 }
 0x8b5   : > { %3519 = vrsqrt.f32 %v1481_v19 }
 0x8bf   : > { %v3520_v12 = vpop.eup %3519 }
 0x8c0   : > { %v1483_v24 = vmul.f32 %v3520_v12, %v1475_v58 }
 0x8c2   : > { %v1488_v26 = vmul.f32 %v1487_v7, %v1483_v24 }
 0x8c4   : > { %v1493_v27 = vadd.f32 %v1492_v25, %v1488_v26 }
 0x8c6   : > { %3282 = vmatmul.mubr.msk.f32.vlgmr.msra.gmra.mrb[14].mxu1 %vm416_vm2, %v1493_v27 }
 0x8c7   : > { %3311 = vmatprep.mubr.msk.f32.mxu1 %vm3625_vm0, %v3626_v1  ;;  %3433 = vmatpush3.bf16.msra.mxu1 %v3432_v52 }
 0x8c8   : > { %3434 = vmatprep.subr.bf16.mxu1 %v3624_v0 }
 0x8cb   : > { %3436 = vmatpush3.bf16.msra.mxu1 %v3435_v55 }
 0x8cc   : > { %3314 = vmatprep.subr.mxu1 %v3626_v1 }
 0x999   : > { %v1567_v33 = vpop.f32.mrb[14].mxu1 }
 0x99a   : > { %v1568_v34 = vadd.f32 %v1567_v33, %v1497_v32  ;;  %v3283_v35 = vpop.f32.mrb[15].mxu1 }
 0x99c   : > { %v1571_v36 = vmax.f32 %v1568_v34, 0.0 }
 0x99e   : > { %3301 = vmatmul.mubr.msk.f32.vlgmr.msra.gmra.mrb[14].mxu0 %vm1576_vm4, %v1571_v36 }
 0x99f   : > { %3321 = vmatprep.mubr.msk.f32.mxu0 %vm3625_vm0, %v3626_v1 }
 0xa71   : > { %v1646_v39 = vpop.f32.mrb[14].mxu0 }
 0xa72   : > { %v1647_v40 = vadd.f32 %v1646_v39, %v1575_v38  ;;  %v3302_v41 = vpop.f32.mrb[15].mxu0 }
 0xa74   : > { %v1650_v42 = vadd.f32 %v1647_v40, %v1493_v27 }
 0xa76   : > { %v1651_v43 = vsel %vm416_vm2, %v1650_v42, 0.0 }
 0xa77   : > { %1652 = vadd.xlane.f32.xlu0 %v1651_v43 }
 0xb04   : > { %v1653_v44 = vpop.xlane.xlu0 %1652 }
 0xb05   : > { %v1654_v46 = vmul.f32 0.03125, %v1653_v44 }
 0xb07   : > { %v1655_v47 = vsub.f32 %v1650_v42, %v1654_v46 }
 0xb09   : > { %v1656_v48 = vmul.f32 %v1655_v47, %v1655_v47 }
 0xb0b   : > { %v1657_v49 = vsel %vm416_vm2, %v1656_v48, 0.0 }
 0xb0c   : > { %1658 = vadd.xlane.f32.xlu1 %v1657_v49 }
 0xb99   : > { %v1659_v56 = vpop.xlane.xlu1 %1658 }
 0xb9a   : > { %v1660_v57 = vmul.f32 0.03125, %v1659_v56 }
 0xb9c   : > { %v1661_v58 = vadd.f32 1e-05, %v1660_v57 }
 0xb9e   : > { %3521 = vrsqrt.f32 %v1661_v58 }
 0xba8   : > { %v3522_v62 = vpop.eup %3521 }
 0xba9   : > { %v1663_v63 = vmul.f32 %v3522_v62, %v1655_v47 }
 0xbab   : > { %v1668_v3 = vmul.f32 %v1667_v61, %v1663_v63 }
 0xbad   : > { %v3969_v4 = vadd.f32 %v1672_v2, %v1668_v3 }
 0xbaf   : > { %3312 = vmatmul.mubr.msk.f32.vlgmr.msra.gmra.mrb[16].mxu1 %vm416_vm2, %v3969_v4 }
 0xbb0   : > { %3316 = vmatprep.mubr.msk.f32.mxu1 %vm3625_vm0, %v3626_v1 }
 0xc82   : > { %v1767_v6 = vpop.f32.mrb[16].mxu1 }
 0xc83   : > { %v3982_v8 = vadd.f32 %v1767_v6, %v1697_v5  ;;  %v3313_v22 = vpop.f32.mrb[17].mxu1 }
 0xc85   : > { %1848 = vrot.lane.b32.xlu1 %v3982_v8, %s3627_s19  ;;  %1850 = vrot.lane.b32.xlu0 %v3982_v8, %s3629_s22 }
 0xc89   : > { %1772 = vrot.lane.b32.xlu1 %v3982_v8, %s3628_s20  ;;  %1928 = vrot.lane.b32.xlu0 %v3982_v8, %s3630_s26 }
 0xc8d   : > { %1926 = vrot.lane.b32.xlu1 %v3982_v8, %s3631_s29  ;;  %2006 = vrot.lane.b32.xlu0 %v3982_v8, %s3632_s23 }
 0xc91   : > { %2004 = vrot.lane.b32.xlu1 %v3982_v8, %s3633_s30 }
 0xcf7   : > { %v1849_v16 = vpop.permute.xlu1 %1848  ;;  %v1851_v9 = vpop.permute.xlu0 %1850 }
 0xcf8   : > { %3320 = vmatpush3.xpose.msk.msra.mxu0 %vm493_vm3, %v1851_v9 }
 0xcf9   : > { %3329 = vmatprep.subr.mxu0 %v3626_v1 }
 0xcfb   : > { %v1773_v10 = vpop.permute.xlu1 %1772  ;;  %3322 = vmatmul.mubr.msk.f32.vlgmr.msra.gmra.mrb[16].mxu0 %vm493_vm3, %v1849_v16  ;;  %v1929_v11 = vpop.permute.xlu0 %1928 }
 0xcfc   : > { %3315 = vmatpush3.xpose.msk.msra.mxu1 %vm493_vm3, %v1773_v10  ;;  %3331 = vmatprep.mubr.msk.f32.mxu0 %vm3625_vm0, %v3626_v1 }
 0xcfd   : > { %3324 = vmatprep.subr.mxu1 %v3626_v1 }
 0xcff   : > { %3317 = vmatmul.mubr.msk.f32.vlgmr.msra.gmra.mrb[18].mxu1 %vm493_vm3, %v3982_v8  ;;  %v1927_v13 = vpop.permute.xlu1 %1926  ;;  %v2007_v14 = vpop.permute.xlu0 %2006 }
 0xd00   : > { %3325 = vmatpush3.xpose.msk.msra.mxu1 %vm493_vm3, %v1929_v11  ;;  %3330 = vmatpush3.xpose.msk.msra.mxu0 %vm493_vm3, %v2007_v14 }
 0xd01   : > { %3326 = vmatprep.mubr.msk.f32.mxu1 %vm3625_vm0, %v3626_v1  ;;  %3339 = vmatprep.subr.mxu0 %v3626_v1 }
 0xd02   : > { %3334 = vmatprep.subr.mxu1 %v3626_v1 }
 0xd03   : > { %v2005_v17 = vpop.permute.xlu1 %2004  ;;  %3327 = vmatmul.mubr.msk.f32.vlgmr.msra.gmra.mrb[20].mxu1 %vm493_vm3, %v1927_v13 }
 0xd04   : > { %3332 = vmatmul.mubr.msk.f32.vlgmr.msra.gmra.mrb[18].mxu0 %vm493_vm3, %v2005_v17  ;;  %3336 = vmatprep.mubr.msk.f32.mxu1 %vm3625_vm0, %v3626_v1 }
 0xd05   : > { %3341 = vmatprep.mubr.msk.f32.mxu0 %vm3625_vm0, %v3626_v1 }
 0xdce   : > { %v1922_v18 = vpop.f32.mrb[16].mxu0 }
 0xdcf   : > { %v2083_v19 = vmul.f32 0.35355338, %v1922_v18  ;;  %v3323_v7 = vpop.f32.mrb[17].mxu0 }
 0xdd1   : > { %v2089_v12 = vsel %vm493_vm3, %v2083_v19, -inf }
 0xdd2   : > { %2090 = vmax.xlane.f32.xlu0 %v2089_v12  ;;  %v1844_v24 = vpop.f32.mrb[18].mxu1 }
 0xdd3   : > { %v3318_v25 = vpop.f32.mrb[19].mxu1  ;;  %v2082_v36 = vmul.f32 0.35355338, %v1844_v24 }
 0xdd5   : > { %v2086_v40 = vsel %vm493_vm3, %v2082_v36, -inf }
 0xdd6   : > { %v2000_v26 = vpop.f32.mrb[20].mxu1 }
 0xdd7   : > { %v3328_v27 = vpop.f32.mrb[21].mxu1  ;;  %v2078_v28 = vpop.f32.mrb[18].mxu0  ;;  %v2084_v39 = vmul.f32 0.35355338, %v2000_v26 }
 0xdd8   : > { %v3333_v29 = vpop.f32.mrb[19].mxu0  ;;  %v2085_v41 = vmul.f32 0.35355338, %v2078_v28 }
 0xdd9   : > { %v2092_v42 = vsel %vm493_vm3, %v2084_v39, -inf }
 0xdda   : > { %v2095_v43 = vsel %vm493_vm3, %v2085_v41, -inf }
 0xde8   : > { %2206 = vrot.lane.b32.xlu0 %v3982_v8, %s3634_s7 }
 0xe5f   : > { %v2091_v30 = vpop.xlane.xlu0 %2090 }
 0xe60   : > { %v2099_v32 = vsub.f32 %v2083_v19, %v2091_v30 }
 0xe62   : > { %v2104_v33 = vmul.f32 1.442695, %v2099_v32 }
 0xe63   : > { %v2207_v34 = vpop.permute.xlu0 %2206 }
 0xe64   : > { %3523 = vpow2.f32 %v2104_v33  ;;  %3340 = vmatpush3.msra.mxu0 %v2207_v34 }
 0xe65   : > { %3349 = vmatprep.subr.mxu0 %v3626_v1 }
 0xe6e   : > { %v3524_v35 = vpop.eup %3523 }
 0xe6f   : > { %v2113_v38 = vsel %vm493_vm3, %v3524_v35, 0.0 }
 0xe70   : > { %2114 = vadd.xlane.f32.xlu1 %v2113_v38 }
 0xe74   : > { %2087 = vmax.xlane.f32.xlu1 %v2086_v40 }
 0xe78   : > { %2093 = vmax.xlane.f32.xlu1 %v2092_v42  ;;  %v2747_v42 = vrot.slane %v3978_v20, %v3909_v45 }
 0xe7c   : > { %2096 = vmax.xlane.f32.xlu1 %v2095_v43 }
 0xefd   : > { %v2115_v44 = vpop.xlane.xlu1 %2114 }
 0xefe   : > { %3525 = vrcp.f32 %v2115_v44 }
 0xf01   : > { %v2088_v46 = vpop.xlane.xlu1 %2087 }
 0xf02   : > { %v2098_v47 = vsub.f32 %v2082_v36, %v2088_v46 }
 0xf04   : > { %v2102_v48 = vmul.f32 1.442695, %v2098_v47 }
 0xf05   : > { %v2094_v49 = vpop.xlane.xlu1 %2093 }
 0xf06   : > { %3527 = vpow2.f32 %v2102_v48  ;;  %v2100_v52 = vsub.f32 %v2084_v39, %v2094_v49 }
 0xf08   : > { %v3526_v55 = vpop.eup %3525  ;;  %v2106_v56 = vmul.f32 1.442695, %v2100_v52 }
 0xf09   : > { %v2127_v57 = vmul.f32 %v3526_v55, %v3524_v35  ;;  %v2097_v58 = vpop.xlane.xlu1 %2096 }
 0xf0a   : > { %3529 = vpow2.f32 %v2106_v56  ;;  %v2101_v61 = vsub.f32 %v2085_v41, %v2097_v58  ;;  %v1676_v58 = vld [vmem:[#allocation2 + $0x48] sm:$0xff] }
 0xf0b   : > { %3342 = vmatmul.mubr.msk.f32.vlgmr.msra.gmra.mrb[20].mxu0 %vm493_vm3, %v2127_v57 }
 0xf0c   : > { %v2108_v62 = vmul.f32 1.442695, %v2101_v61  ;;  %3351 = vmatprep.mubr.msk.f32.mxu0 %vm3625_vm0, %v3626_v1  ;;  %v1678_v61 = vld [vmem:[#allocation2 + $0x58] sm:$0xff] }
 0xf0e   : > { %3531 = vpow2.f32 %v2108_v62  ;;  %v3438_v62 = vpack.c.bf16 %v1678_v61, %v1676_v58 }
 0xf10   : > { %v3528_v63 = vpop.eup %3527 }
 0xf11   : > { %v2110_v2 = vsel %vm493_vm3, %v3528_v63, 0.0 }
 0xf12   : > { %2111 = vadd.xlane.f32.xlu1 %v2110_v2  ;;  %v1682_v2 = vld [vmem:[#allocation2 + $0x78] sm:$0xff] }
 0xf14   : > { %v3530_v3 = vpop.eup %3529 }
 0xf15   : > { %v2116_v5 = vsel %vm493_vm3, %v3530_v3, 0.0 }
 0xf16   : > { %2117 = vadd.xlane.f32.xlu1 %v2116_v5  ;;  %v1685_v5 = vld [vmem:[#allocation4 + $0x48] sm:$0xff] }
 0xf18   : > { %v3532_v6 = vpop.eup %3531 }
 0xf19   : > { %v2119_v22 = vsel %vm493_vm3, %v3532_v6, 0.0 }
 0xf1a   : > { %2120 = vadd.xlane.f32.xlu0 %v2119_v22 }
 0xf27   : > { %2130 = vrot.lane.b32.xlu1 %v3982_v8, %s3636_s9 }
 0xf2b   : > { %2283 = vrot.lane.b32.xlu1 %v3949_v51, %s3635_s8 }
 0xf2f   : > { %2436 = vrot.lane.b32.xlu1 %v3982_v8, %s3637_s25 }
 0xf30   : > { %2360 = vrot.lane.b32.xlu0 %v3947_v50, %s3635_s8 }
 0xf33   : > { %2590 = vrot.lane.b32.xlu1 %v3982_v8, %s3638_s27 }
 0xf37   : > { %2513 = vrot.lane.b32.xlu1 %v3953_v53, %s3635_s8 }
 0xf3b   : > { %2667 = vrot.lane.b32.xlu1 %v3955_v54, %s3635_s8 }
 0xf9f   : > { %v2112_v16 = vpop.xlane.xlu1 %2111 }
 0xfa0   : > { %3533 = vrcp.f32 %v2112_v16  ;;  %v1687_v16 = vld [vmem:[#allocation4 + $0x58] sm:$0xff] }
 0xfa3   : > { %v2118_v9 = vpop.xlane.xlu1 %2117 }
 0xfa4   : > { %3535 = vrcp.f32 %v2118_v9 }
 0xfa7   : > { %v2121_v10 = vpop.xlane.xlu0 %2120  ;;  %v2131_v51 = vpop.permute.xlu1 %2130 }
 0xfa8   : > { %3335 = vmatpush3.msra.mxu1 %v2131_v51  ;;  %3537 = vrcp.f32 %v2121_v10  ;;  %v1688_v10 = vld [vmem:[#allocation4 + $0x60] sm:$0xff]  ;;  %v1689_v51 = vld [vmem:[#allocation4 + $0x68] sm:$0xff] }
 0xfa9   : > { %3344 = vmatprep.subr.mxu1 %v3626_v1 }
 0xfaa   : > { %v3534_v11 = vpop.eup %3533 }
 0xfab   : > { %v2126_v13 = vmul.f32 %v3534_v11, %v3528_v63  ;;  %v2361_v50 = vpop.permute.xlu0 %2360  ;;  %v2284_v14 = vpop.permute.xlu1 %2283  ;;  %v1680_v63 = vld [vmem:[#allocation2 + $0x68] sm:$0xff]  ;;  %v3450_v11 = vpack.c.bf16 %v1689_v51, %v1688_v10 }
 0xfac   : > { %3350 = vmatpush3.msra.mxu0 %v2361_v50 }
 0xfad   : > { %3337 = vmatmul.mubr.msk.f32.vlgmr.msra.gmra.mrb[22].mxu1 %vm493_vm3, %v2126_v13  ;;  %3359 = vmatprep.subr.mxu0 %v3626_v1 }
 0xfae   : > { %3345 = vmatpush3.msra.mxu1 %v2284_v14  ;;  %3346 = vmatprep.mubr.msk.f32.mxu1 %vm3625_vm0, %v3626_v1  ;;  %v3536_v54 = vpop.eup %3535 }
 0xfaf   : > { %3354 = vmatprep.subr.mxu1 %v3626_v1  ;;  %v2437_v53 = vpop.permute.xlu1 %2436  ;;  %v2128_v18 = vmul.f32 %v3536_v54, %v3530_v3  ;;  %v3441_v3 = vpack.c.bf16 %v1682_v2, %v1680_v63 }
 0xfb2   : > { %v3538_v19 = vpop.eup %3537 }
 0xfb3   : > { %v2591_v7 = vpop.permute.xlu1 %2590  ;;  %v2129_v12 = vmul.f32 %v3538_v19, %v3532_v6  ;;  %v1686_v6 = vld [vmem:[#allocation4 + $0x50] sm:$0xff] }
 0xfb4   : > { %v3447_v9 = vpack.c.bf16 %v1687_v16, %v1686_v6 }
 0xfb7   : > { %v2514_v24 = vpop.permute.xlu1 %2513 }
 0xfbb   : > { %v2668_v29 = vpop.permute.xlu1 %2667 }
 0xfde   : > { %v2278_v8 = vpop.f32.mrb[20].mxu0 }
 0xfdf   : > { %v3343_v17 = vpop.f32.mrb[21].mxu0  ;;  %3347 = vmatmul.mubr.msk.f32.vlgmr.msra.gmra.mrb[24].mxu1 %vm493_vm3, %v2278_v8 }
 0xfe0   : > { %3355 = vmatpush3.msra.mxu1 %v2437_v53  ;;  %3356 = vmatprep.mubr.msk.f32.mxu1 %vm3625_vm0, %v3626_v1  ;;  %v2766_v53 = vrot.slane %v3978_v20, %v1486_v21  ;;  %v2771_v17 = vrot.slane %v3978_v20, %v1491_v23  ;;  %v2854_v23 = vrot.slane %v3978_v20, %v1574_v37 }
 0xfe1   : > { %3364 = vmatprep.subr.mxu1 %v3626_v1  ;;  %v2945_v37 = vrot.slane %v3978_v20, %v1666_v59 }
 0xfe3   : > { %3357 = vmatmul.mubr.msk.f32.vlgmr.msra.gmra.mrb[26].mxu1 %vm493_vm3, %v2128_v18 }
 0xfe4   : > { %3365 = vmatpush3.msra.mxu1 %v2591_v7  ;;  %3366 = vmatprep.mubr.msk.f32.mxu1 %vm3625_vm0, %v3626_v1  ;;  %v1690_v7 = vld [vmem:[#allocation4 + $0x70] sm:$0xff] }
 0xfe5   : > { %3437 = vmatprep.subr.bf16.mxu1 %v3624_v0 }
 0xfe7   : > { %3367 = vmatmul.mubr.msk.f32.vlgmr.msra.gmra.mrb[28].mxu1 %vm493_vm3, %v2129_v12 }
 0xfe8   : > { %3382 = vmatprep.mubr.msk.f32.mxu1 %vm3625_vm0, %v3626_v1  ;;  %3439 = vmatpush3.bf16.msra.mxu1 %v3438_v62  ;;  %v2973_v62 = vrot.slane %v3545_v15, %v3934_v31 }
 0xfe9   : > { %3440 = vmatprep.subr.bf16.mxu1 %v3624_v0 }
 0xfec   : > { %3442 = vmatpush3.bf16.msra.mxu1 %v3441_v3 }
0x1080   : > { %v2202_v25 = vpop.f32.mrb[22].mxu1 }
0x1081   : > { %v3338_v26 = vpop.f32.mrb[23].mxu1  ;;  %3352 = vmatmul.mubr.msk.f32.vlgmr.msra.gmra.mrb[22].mxu0 %vm493_vm3, %v2202_v25 }
0x1082   : > { %3360 = vmatpush3.msra.mxu0 %v2514_v24  ;;  %3361 = vmatprep.mubr.msk.f32.mxu0 %vm3625_vm0, %v3626_v1  ;;  %v2776_v24 = vrot.slane %v3978_v20, %v3934_v31 }
0x1083   : > { %3369 = vmatprep.subr.mxu0 %v3626_v1 }
0x10b2   : > { %v2355_v27 = vpop.f32.mrb[24].mxu1 }
0x10b3   : > { %v3348_v28 = vpop.f32.mrb[25].mxu1 }
0x10b6   : > { %v2508_v30 = vpop.f32.mrb[26].mxu1 }
0x10b7   : > { %v3358_v32 = vpop.f32.mrb[27].mxu1  ;;  %3362 = vmatmul.mubr.msk.f32.vlgmr.msra.gmra.mrb[24].mxu0 %vm493_vm3, %v2508_v30 }
0x10b8   : > { %3370 = vmatpush3.msra.mxu0 %v2668_v29  ;;  %3371 = vmatprep.mubr.msk.f32.mxu0 %vm3625_vm0, %v3626_v1 }
0x10b9   : > { %3443 = vmatprep.subr.bf16.mxu0 %v3624_v0 }
0x10ba   : > { %v2662_v33 = vpop.f32.mrb[28].mxu1 }
0x10bb   : > { %v3368_v34 = vpop.f32.mrb[29].mxu1  ;;  %3372 = vmatmul.mubr.msk.f32.vlgmr.msra.gmra.mrb[26].mxu0 %vm493_vm3, %v2662_v33 }
0x10bc   : > { %3401 = vmatprep.mubr.msk.f32.mxu0 %vm3625_vm0, %v3626_v1 }
0x1154   : > { %v2432_v35 = vpop.f32.mrb[22].mxu0 }
0x1155   : > { %v2433_v36 = vadd.f32 %v2432_v35, %v2355_v27  ;;  %v3353_v38 = vpop.f32.mrb[23].mxu0 }
0x118a   : > { %v2585_v39 = vpop.f32.mrb[24].mxu0 }
0x118b   : > { %v2589_v40 = vadd.f32 %v2585_v39, %v2433_v36  ;;  %v3363_v41 = vpop.f32.mrb[25].mxu0 }
0x118e   : > { %v2739_v43 = vpop.f32.mrb[26].mxu0 }
0x118f   : > { %v2743_v44 = vadd.f32 %v2739_v43, %v2589_v40  ;;  %v3373_v46 = vpop.f32.mrb[27].mxu0 }
0x1190   : > { %v2950_v46 = vrot.slane %v3978_v20, %v1671_v60  ;;  %v2968_v60 = vrot.slane %v3545_v15, %v3909_v45 }
0x1191   : > { %v2748_v47 = vadd.f32 %v2747_v42, %v2743_v44 }
0x1193   : > { %v2749_v48 = vadd.f32 %v2748_v47, %v3969_v4  ;;  %v1684_v4 = vld [vmem:[#allocation4 + $0x40] sm:$0xff] }
0x1194   : > { %v3444_v22 = vpack.c.bf16 %v1685_v5, %v1684_v4 }
0x1195   : > { %v2750_v49 = vsel %vm416_vm2, %v2749_v48, 0.0 }
0x1196   : > { %2751 = vadd.xlane.f32.xlu1 %v2750_v49  ;;  %3445 = vmatpush3.bf16.msra.mxu0 %v3444_v22 }
0x1197   : > { %3446 = vmatprep.subr.bf16.mxu0 %v3624_v0 }
0x119a   : > { %3448 = vmatpush3.bf16.msra.mxu0 %v3447_v9 }
0x119b   : > { %3449 = vmatprep.subr.bf16.mxu0 %v3624_v0 }
0x119e   : > { %3451 = vmatpush3.bf16.msra.mxu0 %v3450_v11 }
0x119f   : > { %3452 = vmatprep.subr.bf16.mxu0 %v3624_v0  ;;  %v1691_v0 = vld [vmem:[#allocation4 + $0x78] sm:$0xff] }
0x11a0   : > { %v3453_v12 = vpack.c.bf16 %v1691_v0, %v1690_v7 }
0x11a2   : > { %3454 = vmatpush3.bf16.msra.mxu0 %v3453_v12 }
0x1223   : > { %v2752_v52 = vpop.xlane.xlu1 %2751 }
0x1224   : > { %v2753_v1 = vmul.f32 0.03125, %v2752_v52 }
0x1226   : > { %v2754_v55 = vsub.f32 %v2749_v48, %v2753_v1 }
0x1228   : > { %v2755_v56 = vmul.f32 %v2754_v55, %v2754_v55 }
0x122a   : > { %v2756_v57 = vsel %vm416_vm2, %v2755_v56, 0.0 }
0x122b   : > { %2757 = vadd.xlane.f32.xlu0 %v2756_v57 }
0x12b8   : > { %v2758_v13 = vpop.xlane.xlu0 %2757 }
0x12b9   : > { %v2759_v50 = vmul.f32 0.03125, %v2758_v13 }
0x12bb   : > { %v2760_v14 = vadd.f32 1e-05, %v2759_v50 }
0x12bd   : > { %3539 = vrsqrt.f32 %v2760_v14 }
0x12c7   : > { %v3540_v54 = vpop.eup %3539 }
0x12c8   : > { %v2762_v8 = vmul.f32 %v3540_v54, %v2754_v55 }
0x12ca   : > { %v2767_v18 = vmul.f32 %v2766_v53, %v2762_v8 }
0x12cc   : > { %v2772_v19 = vadd.f32 %v2771_v17, %v2767_v18 }
0x12ce   : > { %3383 = vmatmul.mubr.msk.f32.vlgmr.msra.gmra.mrb[30].mxu1 %vm416_vm2, %v2772_v19 }
0x13a1   : > { %v2846_v25 = vpop.f32.mrb[30].mxu1 }
0x13a2   : > { %v2847_v26 = vadd.f32 %v2846_v25, %v2776_v24  ;;  %v3384_v21 = vpop.f32.mrb[31].mxu1 }
0x13a4   : > { %v2850_v27 = vmax.f32 %v2847_v26, 0.0 }
0x13a6   : > { %3402 = vmatmul.mubr.msk.f32.vlgmr.msra.gmra.mrb[28].mxu0 %vm1576_vm4, %v2850_v27 }
0x1479   : > { %v2924_v28 = vpop.f32.mrb[28].mxu0 }
0x147a   : > { %v2925_v29 = vadd.f32 %v2924_v28, %v2854_v23  ;;  %v3403_v30 = vpop.f32.mrb[29].mxu0 }
0x147c   : > { %v2928_v32 = vadd.f32 %v2925_v29, %v2772_v19 }
0x147e   : > { %v2929_v33 = vsel %vm416_vm2, %v2928_v32, 0.0 }
0x147f   : > { %2930 = vadd.xlane.f32.xlu1 %v2929_v33 }
0x150c   : > { %v2931_v34 = vpop.xlane.xlu1 %2930 }
0x150d   : > { %v2932_v35 = vmul.f32 0.03125, %v2931_v34 }
0x150f   : > { %v2933_v36 = vsub.f32 %v2928_v32, %v2932_v35 }
0x1511   : > { %v2934_v38 = vmul.f32 %v2933_v36, %v2933_v36 }
0x1513   : > { %v2935_v39 = vsel %vm416_vm2, %v2934_v38, 0.0 }
0x1514   : > { %2936 = vadd.xlane.f32.xlu1 %v2935_v39 }
0x15a1   : > { %v2937_v40 = vpop.xlane.xlu1 %2936 }
0x15a2   : > { %v2938_v41 = vmul.f32 0.03125, %v2937_v40 }
0x15a4   : > { %v2939_v42 = vadd.f32 1e-05, %v2938_v41 }
0x15a6   : > { %3541 = vrsqrt.f32 %v2939_v42 }
0x15b0   : > { %v3542_v43 = vpop.eup %3541 }
0x15b1   : > { %v2941_v44 = vmul.f32 %v3542_v43, %v2933_v36 }
0x15b3   : > { %v2946_v47 = vmul.f32 %v2945_v37, %v2941_v44 }
0x15b5   : > { %v2951_v48 = vadd.f32 %v2950_v46, %v2946_v47 }
0x15b7   : > { %v2952_v49 = vsel %vm416_vm2, %v2951_v48, 0.0 }
0x15b8   : > { %2953 = vadd.xlane.f32.xlu0 %v2952_v49 }
0x1645   : > { %v2954_v52 = vpop.xlane.xlu0 %2953 }
0x1646   : > { %v2955_v1 = vmul.f32 0.03125, %v2954_v52 }
0x1648   : > { %v2956_v55 = vsub.f32 %v2951_v48, %v2955_v1 }
0x164a   : > { %v2957_v56 = vmul.f32 %v2956_v55, %v2956_v55 }
0x164c   : > { %v2958_v57 = vsel %vm416_vm2, %v2957_v56, 0.0 }
0x164d   : > { %2959 = vadd.xlane.f32.xlu1 %v2958_v57 }
0x16da   : > { %v2960_v59 = vpop.xlane.xlu1 %2959 }
0x16db   : > { %v2961_v58 = vmul.f32 0.03125, %v2960_v59 }
0x16dd   : > { %v2962_v61 = vadd.f32 1e-05, %v2961_v58 }
0x16df   : > { %3543 = vrsqrt.f32 %v2962_v61 }
0x16e9   : > { %v3544_v20 = vpop.eup %3543 }
0x16ea   : > { %v2964_v63 = vmul.f32 %v3544_v20, %v2956_v55 }
0x16ec   : > { %v2969_v2 = vmul.f32 %v2968_v60, %v2964_v63 }
0x16ee   : > { %v2974_v3 = vadd.f32 %v2973_v62, %v2969_v2 }
0x16f0   : > { %2975 = vst.msk [vmem:[%s279_s16] sm:$0xff] %vm416_vm2, %v2974_v3 }
0x16f1 PF: > { %s18_s21 = sadd.s32 1, %s3616_s21  }
0x16f2   : > { %p15_p5 = scmp.ge.s32.totalorder %s18_s21, 4  }
0x16f4   :  { %17 = sbr.rel (!%p15_p5) target bundleno = 2 (0x2), region = 86 }
0x16fb   :  { %2995 = vsyncpa [#allocation3], 1 }
0x16fc   :  { %2997 = vsyncpa [#allocation3 + $0x1], 1 }
0x16fd   :  { %2998 = vsyncpa [#allocation5], 1 }

</bundles_post_ra>
